<compile_context>
chip_gen: v7x
topology: tpu7x:2x2x1
jax: 0.10.0
libtpu: 0.0.40
codegen_flags: <defaults>
</compile_context>

<pallas_src>
import collections
import numpy as np
import jax
import jax.numpy as jnp
from jax import lax
from jax.experimental import pallas as pl
from jax.experimental.pallas import tpu as pltpu

BN_EPS = 1e-5
VMEM_LIMIT = 48 * 1024 * 1024   # explicit scoped-VMEM cap (leaves headroom on v7x's 64 MiB)


def _compiler_params():
    return pltpu.CompilerParams(dimension_semantics=("parallel",),
                                vmem_limit_bytes=VMEM_LIMIT)


def _full_spec(shape):
    """BlockSpec covering the whole (small) array, identical on every grid step."""
    return pl.BlockSpec(shape, lambda *args, s=shape: (0,) * len(s))


def _bn_scale_shift(stats, gamma, beta, count):
    """Finalize BatchNorm from per-image (sum, sumsq) partials.

    stats: (Nimg, 2, C) partial sums; gamma/beta: (1, C).  Returns per-channel
    (scale, shift), each (1, C), with single-pass variance clamped at 0.
    """
    s = jnp.sum(stats, axis=0)                          # (2, C)
    inv_n = 1.0 / float(count)
    mean = s[0:1, :] * inv_n                            # (1, C)
    var = jnp.maximum(s[1:2, :] * inv_n - mean * mean, 0.0)
    scale = gamma * lax.rsqrt(var + BN_EPS)
    shift = beta - mean * scale
    return scale, shift


# ----------------------------------------------------------------------------
# Input-node kernel: ReLU -> depthwise 3x3 stride-2 -> pointwise 1x1 (MXU)
# Emits pre-BN activations + per-image (sum, sumsq) channel partials.
# ----------------------------------------------------------------------------
def make_input_node_kernel(H, W, Cin, Cout):
    Ho, Wo = H // 2, W // 2

    def kernel(x00, x01, x10, x11, dw_w_ref, dw_b_ref, pw_w_ref, pw_b_ref,
               y_ref, st_ref):
        # ReLU.  Stage input was zero-padded (pad=1) before the parity split;
        # relu(0) == 0 so relu-after-pad == pad-after-relu.
        xs = [jnp.maximum(r[0], 0.0) for r in (x00, x01, x10, x11)]
        dww = dw_w_ref[...]                                        # (9, Cin)

        acc = None
        for di in range(3):
            for dj in range(3):
                rp, ro = di % 2, di // 2
                cp, co = dj % 2, dj // 2
                patch = xs[rp * 2 + cp][ro:ro + Ho, co:co + Wo, :]
                k = di * 3 + dj
                term = patch * dww[k:k + 1, :].reshape(1, 1, Cin)
                acc = term if acc is None else acc + term          # seed from tap 0
        acc = acc + dw_b_ref[...].reshape(1, 1, Cin)

        y = jnp.dot(acc.reshape(Ho * Wo, Cin), pw_w_ref[...],
                    preferred_element_type=jnp.float32) + pw_b_ref[...]

        st_ref[0:1, 0:1, :] = jnp.sum(y, axis=0, keepdims=True).reshape(1, 1, Cout)
        st_ref[0:1, 1:2, :] = jnp.sum(y * y, axis=0, keepdims=True).reshape(1, 1, Cout)
        y_ref[...] = y.reshape(1, Ho, Wo, Cout)

    return kernel


def input_node_pallas(splits, params):
    """splits: 4 parity-split tensors of the padded stage input, each
    (N, H/2+1, W/2+1, Cin).  Returns (pre-BN y [N,H/2,W/2,Cout], stats [N,2,Cout])."""
    N, Hs, Ws, Cin = splits[0].shape
    H, W = (Hs - 1) * 2, (Ws - 1) * 2
    Ho, Wo = H // 2, W // 2
    Cout = params["pw_w"].shape[1]

    kernel = make_input_node_kernel(H, W, Cin, Cout)
    split_spec = pl.BlockSpec((1, Hs, Ws, Cin), lambda n: (n, 0, 0, 0))
    in_specs = [split_spec] * 4 + [
        _full_spec((9, Cin)), _full_spec((1, Cin)),
        _full_spec((Cin, Cout)), _full_spec((1, Cout)),
    ]
    out_shape = (jax.ShapeDtypeStruct((N, Ho, Wo, Cout), jnp.float32),
                 jax.ShapeDtypeStruct((N, 2, Cout), jnp.float32))
    out_specs = (pl.BlockSpec((1, Ho, Wo, Cout), lambda n: (n, 0, 0, 0)),
                 pl.BlockSpec((1, 2, Cout), lambda n: (n, 0, 0)))
    return pl.pallas_call(
        kernel, grid=(N,), in_specs=in_specs, out_specs=out_specs,
        out_shape=out_shape, compiler_params=_compiler_params(),
    )(*splits, params["dw_w"], params["dw_b"], params["pw_w"], params["pw_b"])


# ----------------------------------------------------------------------------
# Interior-node kernel: fused producer-BN finalize+apply -> ReLU ->
# depthwise 3x3 stride-1 (taps from in-kernel zero-padded VMEM scratch) ->
# pointwise 1x1 (MXU).  Emits pre-BN activations + per-image stats partials.
# ----------------------------------------------------------------------------
def make_interior_node_kernel(H, W, Cin, Cout, bn_count):
    def kernel(x_ref, st_in_ref, gamma_ref, beta_ref,
               dw_w_ref, dw_b_ref, pw_w_ref, pw_b_ref,
               y_ref, st_ref, pad_ref):
        # Producer BatchNorm (global stats over N*H*W) fused here, then ReLU.
        scale, shift = _bn_scale_shift(st_in_ref[...], gamma_ref[...],
                                       beta_ref[...], bn_count)
        a = jnp.maximum(x_ref[0] * scale.reshape(1, 1, Cin)
                        + shift.reshape(1, 1, Cin), 0.0)            # (H, W, Cin)

        # Zero-padded (pad=1) copy in VMEM scratch.  Re-zero the border every
        # step (scratch persists across grid steps / cores).
        pad_ref[0:1, :, :] = jnp.zeros((1, W + 2, Cin), jnp.float32)
        pad_ref[H + 1:H + 2, :, :] = jnp.zeros((1, W + 2, Cin), jnp.float32)
        pad_ref[:, 0:1, :] = jnp.zeros((H + 2, 1, Cin), jnp.float32)
        pad_ref[:, W + 1:W + 2, :] = jnp.zeros((H + 2, 1, Cin), jnp.float32)
        pad_ref[1:H + 1, 1:W + 1, :] = a

        dww = dw_w_ref[...]                                          # (9, Cin)
        acc = None
        for di in range(3):
            for dj in range(3):
                patch = pad_ref[di:di + H, dj:dj + W, :]
                k = di * 3 + dj
                term = patch * dww[k:k + 1, :].reshape(1, 1, Cin)
                acc = term if acc is None else acc + term            # seed from tap 0
        acc = acc + dw_b_ref[...].reshape(1, 1, Cin)

        y = jnp.dot(acc.reshape(H * W, Cin), pw_w_ref[...],
                    preferred_element_type=jnp.float32) + pw_b_ref[...]

        st_ref[0:1, 0:1, :] = jnp.sum(y, axis=0, keepdims=True).reshape(1, 1, Cout)
        st_ref[0:1, 1:2, :] = jnp.sum(y * y, axis=0, keepdims=True).reshape(1, 1, Cout)
        y_ref[...] = y.reshape(1, H, W, Cout)

    return kernel


def interior_node_pallas(y_src, st_src, gamma_src, beta_src, params):
    N, H, W, Cin = y_src.shape
    Cout = params["pw_w"].shape[1]
    bn_count = N * H * W                    # producer's global BN element count

    kernel = make_interior_node_kernel(H, W, Cin, Cout, bn_count)
    in_specs = [
        pl.BlockSpec((1, H, W, Cin), lambda n: (n, 0, 0, 0)),
        _full_spec((N, 2, Cin)), _full_spec((1, Cin)), _full_spec((1, Cin)),
        _full_spec((9, Cin)), _full_spec((1, Cin)),
        _full_spec((Cin, Cout)), _full_spec((1, Cout)),
    ]
    out_shape = (jax.ShapeDtypeStruct((N, H, W, Cout), jnp.float32),
                 jax.ShapeDtypeStruct((N, 2, Cout), jnp.float32))
    out_specs = (pl.BlockSpec((1, H, W, Cout), lambda n: (n, 0, 0, 0)),
                 pl.BlockSpec((1, 2, Cout), lambda n: (n, 0, 0)))
    return pl.pallas_call(
        kernel, grid=(N,), in_specs=in_specs, out_specs=out_specs,
        out_shape=out_shape,
        scratch_shapes=[pltpu.VMEM((H + 2, W + 2, Cin), jnp.float32)],
        compiler_params=_compiler_params(),
    )(y_src, st_src, gamma_src, beta_src,
      params["dw_w"], params["dw_b"], params["pw_w"], params["pw_b"])


# ----------------------------------------------------------------------------
# Combine kernel: finalize+apply BN of every output node, average them.
# ----------------------------------------------------------------------------
def make_combine_kernel(n_out, H, W, C, bn_count):
    inv = 1.0 / float(n_out)

    def kernel(*refs):
        out_ref = refs[-1]
        acc = None
        for o in range(n_out):
            y_ref, st_ref, g_ref, b_ref = refs[4 * o:4 * o + 4]
            scale, shift = _bn_scale_shift(st_ref[...], g_ref[...], b_ref[...],
                                           bn_count)
            yo = y_ref[0] * scale.reshape(1, 1, C) + shift.reshape(1, 1, C)
            acc = yo if acc is None else acc + yo
        out_ref[...] = (acc * inv).reshape(1, H, W, C)

    return kernel


def combine_outputs_pallas(outs):
    """outs: list of (pre-BN y [N,H,W,C], stats [N,2,C], gamma [1,C], beta [1,C])."""
    n_out = len(outs)
    N, H, W, C = outs[0][0].shape
    bn_count = N * H * W

    kernel = make_combine_kernel(n_out, H, W, C, bn_count)
    in_specs, args = [], []
    for (y, st, g, b) in outs:
        in_specs += [
            pl.BlockSpec((1, H, W, C), lambda n: (n, 0, 0, 0)),
            _full_spec((N, 2, C)), _full_spec((1, C)), _full_spec((1, C)),
        ]
        args += [y, st, g, b]
    return pl.pallas_call(
        kernel, grid=(N,), in_specs=in_specs,
        out_specs=pl.BlockSpec((1, H, W, C), lambda n: (n, 0, 0, 0)),
        out_shape=jax.ShapeDtypeStruct((N, H, W, C), jnp.float32),
        compiler_params=_compiler_params(),
    )(*args)


# ----------------------------------------------------------------------------
# StageBlock forward (graph wiring is Python glue; all math is in Pallas)
# ----------------------------------------------------------------------------
def stage_block_forward(x_nchw, node_params, nodes, input_nodes, output_nodes):
    x = jnp.transpose(x_nchw, (0, 2, 3, 1))          # NCHW -> NHWC (C on lanes)

    # One-time zero-pad + even/odd parity layout of the *stage input* for the
    # stride-2 input nodes (so every stride-2 tap is a contiguous slice).
    xp = jnp.pad(x, ((0, 0), (1, 1), (1, 1), (0, 0)))
    splits = [xp[:, p::2, q::2, :] for p in range(2) for q in range(2)]

    results = {}   # nid -> (pre-BN activations, per-image stats, gamma, beta)
    for nid in input_nodes:
        p = node_params[nid]
        y, st = input_node_pallas(splits, p)
        results[nid] = (y, st, p["gamma"], p["beta"])
    for nid, node in enumerate(nodes):
        if nid not in input_nodes:
            # PyTorch Node_OP.forward's for/else makes the weighted aggregation
            # dead code: out = conv(inputs[0]).  Reproduced exactly.
            p = node_params[nid]
            y_src, st_src, g_src, b_src = results[node.inputs[0]]
            y, st = interior_node_pallas(y_src, st_src, g_src, b_src, p)
            results[nid] = (y, st, p["gamma"], p["beta"])
    res = combine_outputs_pallas([results[o] for o in output_nodes])
    return jnp.transpose(res, (0, 3, 1, 2))          # NHWC -> NCHW


# ----------------------------------------------------------------------------
# Deterministic parameter init (shapes follow the PyTorch module's __init__)
# ----------------------------------------------------------------------------
def init_triplet_params(key, cin, cout):
    ks = jax.random.split(key, 6)
    return dict(
        # torch depthwise weight (cin, 1, 3, 3) stored here as (3*3, cin)
        dw_w=jax.random.normal(ks[0], (9, cin), jnp.float32) * 0.3,
        dw_b=jax.random.normal(ks[1], (1, cin), jnp.float32) * 0.1,
        # torch pointwise weight (cout, cin, 1, 1) stored here as (cin, cout)
        pw_w=jax.random.normal(ks[2], (cin, cout), jnp.float32) / np.sqrt(cin),
        pw_b=jax.random.normal(ks[3], (1, cout), jnp.float32) * 0.1,
        gamma=1.0 + 0.1 * jax.random.normal(ks[4], (1, cout), jnp.float32),
        beta=0.1 * jax.random.normal(ks[5], (1, cout), jnp.float32),
        # NOTE: Node_OP.mean_weight / sigmoid are never used in the forward pass
        # (dead code due to the for/else bug), so they are not created here.
    )


# ----------------------------------------------------------------------------
# Pure-JAX reference (for correctness check only)
# ----------------------------------------------------------------------------
def triplet_ref(x_nhwc, p, stride):
    cin = x_nhwc.shape[-1]
    xr = jnp.maximum(x_nhwc, 0.0)
    rhs = p["dw_w"].reshape(3, 3, cin)[:, :, None, :]     # HWIO, I=1 (depthwise)
    y = lax.conv_general_dilated(xr, rhs, (stride, stride), ((1, 1), (1, 1)),
                                 dimension_numbers=("NHWC", "HWIO", "NHWC"),
                                 feature_group_count=cin)
    y = y + p["dw_b"].reshape(1, 1, 1, cin)
    y = jnp.einsum("nhwc,cd->nhwd", y, p["pw_w"]) + p["pw_b"].reshape(1, 1, 1, -1)
    mean = jnp.mean(y, axis=(0, 1, 2), keepdims=True)
    var = jnp.mean((y - mean) ** 2, axis=(0, 1, 2), keepdims=True)
    y = (y - mean) * lax.rsqrt(var + BN_EPS)
    return y * p["gamma"].reshape(1, 1, 1, -1) + p["beta"].reshape(1, 1, 1, -1)


def stage_block_ref(x_nchw, node_params, nodes, input_nodes, output_nodes):
    x = jnp.transpose(x_nchw, (0, 2, 3, 1))
    results = {}
    for nid in input_nodes:
        results[nid] = triplet_ref(x, node_params[nid], 2)
    for nid, node in enumerate(nodes):
        if nid not in input_nodes:
            results[nid] = triplet_ref(results[node.inputs[0]], node_params[nid], 1)
    res = results[output_nodes[0]]
    for oid in output_nodes[1:]:
        res = res + results[oid]
    res = res / float(len(output_nodes))
    return jnp.transpose(res, (0, 3, 1, 2))


# ----------------------------------------------------------------------------
if __name__ == "__main__":
    Node = collections.namedtuple("Node", ["type", "inputs"])
    # TODO(synk): get_graph_info(graph) (random-graph builder) has no Pallas
    # equivalent; a fixed synthetic DAG stands in for it.
    nodes = [Node(0, []), Node(0, []), Node(1, [0, 1]), Node(1, [1, 2])]
    input_nodes = [0, 1]
    output_nodes = [2, 3]

    inplanes, outplanes = 4, 8
    N, H, W = 2, 16, 16

    key = jax.random.PRNGKey(0)
    keys = jax.random.split(key, len(nodes) + 1)
    x = jax.random.normal(keys[0], (N, inplanes, H, W), jnp.float32)  # NCHW, like PyTorch

    node_params = []
    for nid, node in enumerate(nodes):
        cin = inplanes if node.type == 0 else outplanes
        node_params.append(init_triplet_params(keys[nid + 1], cin, outplanes))

    fwd = jax.jit(lambda xx, pp: stage_block_forward(xx, pp, nodes,
                                                     input_nodes, output_nodes))
    out = jax.block_until_ready(fwd(x, node_params))

    ref = stage_block_ref(x, node_params, nodes, input_nodes, output_nodes)
    np.testing.assert_allclose(np.asarray(out), np.asarray(ref),
                               rtol=1e-3, atol=1e-3)

    print("KERNEL_OK")
</pallas_src>

<mosaic_0001>
module attributes {stable_mosaic.version = 11 : i64} {
  func.func @kernel(%arg0: i32, %arg1: memref<1x9x9x4xf32, #tpu.memory_space<vmem>>, %arg2: memref<1x9x9x4xf32, #tpu.memory_space<vmem>>, %arg3: memref<1x9x9x4xf32, #tpu.memory_space<vmem>>, %arg4: memref<1x9x9x4xf32, #tpu.memory_space<vmem>>, %arg5: memref<9x4xf32, #tpu.memory_space<vmem>>, %arg6: memref<1x4xf32, #tpu.memory_space<vmem>>, %arg7: memref<4x8xf32, #tpu.memory_space<vmem>>, %arg8: memref<1x8xf32, #tpu.memory_space<vmem>>, %arg9: memref<1x8x8x8xf32, #tpu.memory_space<vmem>>, %arg10: memref<1x2x8xf32, #tpu.memory_space<vmem>>) attributes {dimension_semantics = [#tpu.dimension_semantics<parallel>], iteration_bounds = array<i64: 2>, scalar_prefetch = 0 : i64, scratch_operands = 0 : i64, tpu.core_type = #tpu.core_type<tc>, window_params = [{transform_indices = @transform_0, window_bounds = array<i64: 1, 9, 9, 4>}, {transform_indices = @transform_1, window_bounds = array<i64: 1, 9, 9, 4>}, {transform_indices = @transform_2, window_bounds = array<i64: 1, 9, 9, 4>}, {transform_indices = @transform_3, window_bounds = array<i64: 1, 9, 9, 4>}, {pipeline_mode = #tpu.pipeline_mode<synchronous>, transform_indices = @transform_4, window_bounds = array<i64: 9, 4>}, {pipeline_mode = #tpu.pipeline_mode<synchronous>, transform_indices = @transform_5, window_bounds = array<i64: 1, 4>}, {pipeline_mode = #tpu.pipeline_mode<synchronous>, transform_indices = @transform_6, window_bounds = array<i64: 4, 8>}, {pipeline_mode = #tpu.pipeline_mode<synchronous>, transform_indices = @transform_7, window_bounds = array<i64: 1, 8>}, {transform_indices = @transform_8, window_bounds = array<i64: 1, 8, 8, 8>}, {transform_indices = @transform_9, window_bounds = array<i64: 1, 2, 8>}]} {
    %c0 = arith.constant 0 : index
    %c0_0 = arith.constant 0 : index
    %c0_1 = arith.constant 0 : index
    %c0_2 = arith.constant 0 : index
    %0 = vector.load %arg1[%c0, %c0_0, %c0_1, %c0_2] : memref<1x9x9x4xf32, #tpu.memory_space<vmem>>, vector<1x9x9x4xf32>
    %1 = vector.shape_cast %0 : vector<1x9x9x4xf32> to vector<9x9x4xf32>
    %cst = arith.constant 0.000000e+00 : f32
    %2 = vector.broadcast %cst : f32 to vector<9x9x4xf32>
    %3 = arith.maximumf %1, %2 : vector<9x9x4xf32>
    %c0_3 = arith.constant 0 : index
    %c0_4 = arith.constant 0 : index
    %c0_5 = arith.constant 0 : index
    %c0_6 = arith.constant 0 : index
    %4 = vector.load %arg2[%c0_3, %c0_4, %c0_5, %c0_6] : memref<1x9x9x4xf32, #tpu.memory_space<vmem>>, vector<1x9x9x4xf32>
    %5 = vector.shape_cast %4 : vector<1x9x9x4xf32> to vector<9x9x4xf32>
    %cst_7 = arith.constant 0.000000e+00 : f32
    %6 = vector.broadcast %cst_7 : f32 to vector<9x9x4xf32>
    %7 = arith.maximumf %5, %6 : vector<9x9x4xf32>
    %c0_8 = arith.constant 0 : index
    %c0_9 = arith.constant 0 : index
    %c0_10 = arith.constant 0 : index
    %c0_11 = arith.constant 0 : index
    %8 = vector.load %arg3[%c0_8, %c0_9, %c0_10, %c0_11] : memref<1x9x9x4xf32, #tpu.memory_space<vmem>>, vector<1x9x9x4xf32>
    %9 = vector.shape_cast %8 : vector<1x9x9x4xf32> to vector<9x9x4xf32>
    %cst_12 = arith.constant 0.000000e+00 : f32
    %10 = vector.broadcast %cst_12 : f32 to vector<9x9x4xf32>
    %11 = arith.maximumf %9, %10 : vector<9x9x4xf32>
    %c0_13 = arith.constant 0 : index
    %c0_14 = arith.constant 0 : index
    %c0_15 = arith.constant 0 : index
    %c0_16 = arith.constant 0 : index
    %12 = vector.load %arg4[%c0_13, %c0_14, %c0_15, %c0_16] : memref<1x9x9x4xf32, #tpu.memory_space<vmem>>, vector<1x9x9x4xf32>
    %13 = vector.shape_cast %12 : vector<1x9x9x4xf32> to vector<9x9x4xf32>
    %cst_17 = arith.constant 0.000000e+00 : f32
    %14 = vector.broadcast %cst_17 : f32 to vector<9x9x4xf32>
    %15 = arith.maximumf %13, %14 : vector<9x9x4xf32>
    %c0_18 = arith.constant 0 : index
    %c0_19 = arith.constant 0 : index
    %16 = vector.load %arg5[%c0_18, %c0_19] : memref<9x4xf32, #tpu.memory_space<vmem>>, vector<9x4xf32>
    %17 = vector.extract_strided_slice %3 {offsets = [0, 0, 0], sizes = [8, 8, 4], strides = [1, 1, 1]} : vector<9x9x4xf32> to vector<8x8x4xf32>
    %18 = vector.extract_strided_slice %16 {offsets = [0, 0], sizes = [1, 4], strides = [1, 1]} : vector<9x4xf32> to vector<1x4xf32>
    %19 = vector.shape_cast %18 : vector<1x4xf32> to vector<1x1x4xf32>
    %20 = vector.broadcast %19 : vector<1x1x4xf32> to vector<8x8x4xf32>
    %21 = arith.mulf %17, %20 : vector<8x8x4xf32>
    %22 = vector.extract_strided_slice %7 {offsets = [0, 0, 0], sizes = [8, 8, 4], strides = [1, 1, 1]} : vector<9x9x4xf32> to vector<8x8x4xf32>
    %23 = vector.extract_strided_slice %16 {offsets = [1, 0], sizes = [1, 4], strides = [1, 1]} : vector<9x4xf32> to vector<1x4xf32>
    %24 = vector.shape_cast %23 : vector<1x4xf32> to vector<1x1x4xf32>
    %25 = vector.broadcast %24 : vector<1x1x4xf32> to vector<8x8x4xf32>
    %26 = arith.mulf %22, %25 : vector<8x8x4xf32>
    %27 = arith.addf %21, %26 : vector<8x8x4xf32>
    %28 = vector.extract_strided_slice %3 {offsets = [0, 1, 0], sizes = [8, 8, 4], strides = [1, 1, 1]} : vector<9x9x4xf32> to vector<8x8x4xf32>
    %29 = vector.extract_strided_slice %16 {offsets = [2, 0], sizes = [1, 4], strides = [1, 1]} : vector<9x4xf32> to vector<1x4xf32>
    %30 = vector.shape_cast %29 : vector<1x4xf32> to vector<1x1x4xf32>
    %31 = vector.broadcast %30 : vector<1x1x4xf32> to vector<8x8x4xf32>
    %32 = arith.mulf %28, %31 : vector<8x8x4xf32>
    %33 = arith.addf %27, %32 : vector<8x8x4xf32>
    %34 = vector.extract_strided_slice %11 {offsets = [0, 0, 0], sizes = [8, 8, 4], strides = [1, 1, 1]} : vector<9x9x4xf32> to vector<8x8x4xf32>
    %35 = vector.extract_strided_slice %16 {offsets = [3, 0], sizes = [1, 4], strides = [1, 1]} : vector<9x4xf32> to vector<1x4xf32>
    %36 = vector.shape_cast %35 : vector<1x4xf32> to vector<1x1x4xf32>
    %37 = vector.broadcast %36 : vector<1x1x4xf32> to vector<8x8x4xf32>
    %38 = arith.mulf %34, %37 : vector<8x8x4xf32>
    %39 = arith.addf %33, %38 : vector<8x8x4xf32>
    %40 = vector.extract_strided_slice %15 {offsets = [0, 0, 0], sizes = [8, 8, 4], strides = [1, 1, 1]} : vector<9x9x4xf32> to vector<8x8x4xf32>
    %41 = vector.extract_strided_slice %16 {offsets = [4, 0], sizes = [1, 4], strides = [1, 1]} : vector<9x4xf32> to vector<1x4xf32>
    %42 = vector.shape_cast %41 : vector<1x4xf32> to vector<1x1x4xf32>
    %43 = vector.broadcast %42 : vector<1x1x4xf32> to vector<8x8x4xf32>
    %44 = arith.mulf %40, %43 : vector<8x8x4xf32>
    %45 = arith.addf %39, %44 : vector<8x8x4xf32>
    %46 = vector.extract_strided_slice %11 {offsets = [0, 1, 0], sizes = [8, 8, 4], strides = [1, 1, 1]} : vector<9x9x4xf32> to vector<8x8x4xf32>
    %47 = vector.extract_strided_slice %16 {offsets = [5, 0], sizes = [1, 4], strides = [1, 1]} : vector<9x4xf32> to vector<1x4xf32>
    %48 = vector.shape_cast %47 : vector<1x4xf32> to vector<1x1x4xf32>
    %49 = vector.broadcast %48 : vector<1x1x4xf32> to vector<8x8x4xf32>
    %50 = arith.mulf %46, %49 : vector<8x8x4xf32>
    %51 = arith.addf %45, %50 : vector<8x8x4xf32>
    %52 = vector.extract_strided_slice %3 {offsets = [1, 0, 0], sizes = [8, 8, 4], strides = [1, 1, 1]} : vector<9x9x4xf32> to vector<8x8x4xf32>
    %53 = vector.extract_strided_slice %16 {offsets = [6, 0], sizes = [1, 4], strides = [1, 1]} : vector<9x4xf32> to vector<1x4xf32>
    %54 = vector.shape_cast %53 : vector<1x4xf32> to vector<1x1x4xf32>
    %55 = vector.broadcast %54 : vector<1x1x4xf32> to vector<8x8x4xf32>
    %56 = arith.mulf %52, %55 : vector<8x8x4xf32>
    %57 = arith.addf %51, %56 : vector<8x8x4xf32>
    %58 = vector.extract_strided_slice %7 {offsets = [1, 0, 0], sizes = [8, 8, 4], strides = [1, 1, 1]} : vector<9x9x4xf32> to vector<8x8x4xf32>
    %59 = vector.extract_strided_slice %16 {offsets = [7, 0], sizes = [1, 4], strides = [1, 1]} : vector<9x4xf32> to vector<1x4xf32>
    %60 = vector.shape_cast %59 : vector<1x4xf32> to vector<1x1x4xf32>
    %61 = vector.broadcast %60 : vector<1x1x4xf32> to vector<8x8x4xf32>
    %62 = arith.mulf %58, %61 : vector<8x8x4xf32>
    %63 = arith.addf %57, %62 : vector<8x8x4xf32>
    %64 = vector.extract_strided_slice %3 {offsets = [1, 1, 0], sizes = [8, 8, 4], strides = [1, 1, 1]} : vector<9x9x4xf32> to vector<8x8x4xf32>
    %65 = vector.extract_strided_slice %16 {offsets = [8, 0], sizes = [1, 4], strides = [1, 1]} : vector<9x4xf32> to vector<1x4xf32>
    %66 = vector.shape_cast %65 : vector<1x4xf32> to vector<1x1x4xf32>
    %67 = vector.broadcast %66 : vector<1x1x4xf32> to vector<8x8x4xf32>
    %68 = arith.mulf %64, %67 : vector<8x8x4xf32>
    %69 = arith.addf %63, %68 : vector<8x8x4xf32>
    %c0_20 = arith.constant 0 : index
    %c0_21 = arith.constant 0 : index
    %70 = vector.load %arg6[%c0_20, %c0_21] : memref<1x4xf32, #tpu.memory_space<vmem>>, vector<1x4xf32>
    %71 = vector.shape_cast %70 : vector<1x4xf32> to vector<1x1x4xf32>
    %72 = vector.broadcast %71 : vector<1x1x4xf32> to vector<8x8x4xf32>
    %73 = arith.addf %69, %72 : vector<8x8x4xf32>
    %74 = vector.shape_cast %73 : vector<8x8x4xf32> to vector<64x4xf32>
    %c0_22 = arith.constant 0 : index
    %c0_23 = arith.constant 0 : index
    %75 = vector.load %arg7[%c0_22, %c0_23] : memref<4x8xf32, #tpu.memory_space<vmem>>, vector<4x8xf32>
    %cst_24 = arith.constant dense<0.000000e+00> : vector<64x8xf32>
    %76 = tpu.matmul %74, %75, %cst_24 {dimension_numbers = #tpu.dot_dimension_numbers<[1], [0], [0], [1], [0, 0, 1, 1], [], []>} : vector<64x4xf32>, vector<4x8xf32>, vector<64x8xf32> -> vector<64x8xf32>
    %c0_25 = arith.constant 0 : index
    %c0_26 = arith.constant 0 : index
    %77 = vector.load %arg8[%c0_25, %c0_26] : memref<1x8xf32, #tpu.memory_space<vmem>>, vector<1x8xf32>
    %78 = vector.broadcast %77 : vector<1x8xf32> to vector<64x8xf32>
    %79 = arith.addf %76, %78 : vector<64x8xf32>
    %cst_27 = arith.constant dense<0.000000e+00> : vector<8xf32>
    %80 = vector.multi_reduction <add>, %79, %cst_27 [0] : vector<64x8xf32> to vector<8xf32>
    %81 = vector.shape_cast %80 : vector<8xf32> to vector<1x8xf32>
    %82 = vector.shape_cast %81 : vector<1x8xf32> to vector<1x1x8xf32>
    %c0_28 = arith.constant 0 : index
    %c0_29 = arith.constant 0 : index
    %c0_30 = arith.constant 0 : index
    %83 = vector.load %arg10[%c0_28, %c0_29, %c0_30] : memref<1x2x8xf32, #tpu.memory_space<vmem>>, vector<1x1x8xf32>
    tpu.vector_store %arg10[%c0_28, %c0_29, %c0_30], %82 {strides = array<i32>} : memref<1x2x8xf32, #tpu.memory_space<vmem>>, vector<1x1x8xf32>,
    %84 = arith.mulf %79, %79 : vector<64x8xf32>
    %cst_31 = arith.constant dense<0.000000e+00> : vector<8xf32>
    %85 = vector.multi_reduction <add>, %84, %cst_31 [0] : vector<64x8xf32> to vector<8xf32>
    %86 = vector.shape_cast %85 : vector<8xf32> to vector<1x8xf32>
    %87 = vector.shape_cast %86 : vector<1x8xf32> to vector<1x1x8xf32>
    %c0_32 = arith.constant 0 : index
    %c1 = arith.constant 1 : index
    %c0_33 = arith.constant 0 : index
    %88 = vector.load %arg10[%c0_32, %c1, %c0_33] : memref<1x2x8xf32, #tpu.memory_space<vmem>>, vector<1x1x8xf32>
    tpu.vector_store %arg10[%c0_32, %c1, %c0_33], %87 {strides = array<i32>} : memref<1x2x8xf32, #tpu.memory_space<vmem>>, vector<1x1x8xf32>,
    %89 = vector.shape_cast %79 : vector<64x8xf32> to vector<1x8x8x8xf32>
    %c0_34 = arith.constant 0 : index
    %c0_35 = arith.constant 0 : index
    %c0_36 = arith.constant 0 : index
    %c0_37 = arith.constant 0 : index
    %90 = vector.load %arg9[%c0_34, %c0_35, %c0_36, %c0_37] : memref<1x8x8x8xf32, #tpu.memory_space<vmem>>, vector<1x8x8x8xf32>
    tpu.vector_store %arg9[%c0_34, %c0_35, %c0_36, %c0_37], %89 {strides = array<i32>} : memref<1x8x8x8xf32, #tpu.memory_space<vmem>>, vector<1x8x8x8xf32>,
    return
  }
  func.func @transform_0(%arg0: i32) -> (i32, i32, i32, i32) {
    %c0_i32 = arith.constant 0 : i32
    %c0_i32_0 = arith.constant 0 : i32
    %c0_i32_1 = arith.constant 0 : i32
    %c0_i32_2 = arith.constant 0 : i32
    return %arg0, %c0_i32, %c0_i32_0, %c0_i32_1 : i32, i32, i32, i32
  }
  func.func @transform_1(%arg0: i32) -> (i32, i32, i32, i32) {
    %c0_i32 = arith.constant 0 : i32
    %c0_i32_0 = arith.constant 0 : i32
    %c0_i32_1 = arith.constant 0 : i32
    %c0_i32_2 = arith.constant 0 : i32
    return %arg0, %c0_i32, %c0_i32_0, %c0_i32_1 : i32, i32, i32, i32
  }
  func.func @transform_2(%arg0: i32) -> (i32, i32, i32, i32) {
    %c0_i32 = arith.constant 0 : i32
    %c0_i32_0 = arith.constant 0 : i32
    %c0_i32_1 = arith.constant 0 : i32
    %c0_i32_2 = arith.constant 0 : i32
    return %arg0, %c0_i32, %c0_i32_0, %c0_i32_1 : i32, i32, i32, i32
  }
  func.func @transform_3(%arg0: i32) -> (i32, i32, i32, i32) {
    %c0_i32 = arith.constant 0 : i32
    %c0_i32_0 = arith.constant 0 : i32
    %c0_i32_1 = arith.constant 0 : i32
    %c0_i32_2 = arith.constant 0 : i32
    return %arg0, %c0_i32, %c0_i32_0, %c0_i32_1 : i32, i32, i32, i32
  }
  func.func @transform_4(%arg0: i32) -> (i32, i32) {
    %c0_i32 = arith.constant 0 : i32
    %c0_i32_0 = arith.constant 0 : i32
    %c0_i32_1 = arith.constant 0 : i32
    return %c0_i32, %c0_i32_0 : i32, i32
  }
  func.func @transform_5(%arg0: i32) -> (i32, i32) {
    %c0_i32 = arith.constant 0 : i32
    %c0_i32_0 = arith.constant 0 : i32
    %c0_i32_1 = arith.constant 0 : i32
    return %c0_i32, %c0_i32_0 : i32, i32
  }
  func.func @transform_6(%arg0: i32) -> (i32, i32) {
    %c0_i32 = arith.constant 0 : i32
    %c0_i32_0 = arith.constant 0 : i32
    %c0_i32_1 = arith.constant 0 : i32
    return %c0_i32, %c0_i32_0 : i32, i32
  }
  func.func @transform_7(%arg0: i32) -> (i32, i32) {
    %c0_i32 = arith.constant 0 : i32
    %c0_i32_0 = arith.constant 0 : i32
    %c0_i32_1 = arith.constant 0 : i32
    return %c0_i32, %c0_i32_0 : i32, i32
  }
  func.func @transform_8(%arg0: i32) -> (i32, i32, i32, i32) {
    %c0_i32 = arith.constant 0 : i32
    %c0_i32_0 = arith.constant 0 : i32
    %c0_i32_1 = arith.constant 0 : i32
    %c0_i32_2 = arith.constant 0 : i32
    return %arg0, %c0_i32, %c0_i32_0, %c0_i32_1 : i32, i32, i32, i32
  }
  func.func @transform_9(%arg0: i32) -> (i32, i32, i32) {
    %c0_i32 = arith.constant 0 : i32
    %c0_i32_0 = arith.constant 0 : i32
    %c0_i32_1 = arith.constant 0 : i32
    return %arg0, %c0_i32, %c0_i32_0 : i32, i32, i32
  }
}

module attributes {stable_mosaic.version = 11 : i64} {
  func.func @kernel(%arg0: i32, %arg1: memref<1x8x8x8xf32, #tpu.memory_space<vmem>>, %arg2: memref<2x2x8xf32, #tpu.memory_space<vmem>>, %arg3: memref<1x8xf32, #tpu.memory_space<vmem>>, %arg4: memref<1x8xf32, #tpu.memory_space<vmem>>, %arg5: memref<9x8xf32, #tpu.memory_space<vmem>>, %arg6: memref<1x8xf32, #tpu.memory_space<vmem>>, %arg7: memref<8x8xf32, #tpu.memory_space<vmem>>, %arg8: memref<1x8xf32, #tpu.memory_space<vmem>>, %arg9: memref<1x8x8x8xf32, #tpu.memory_space<vmem>>, %arg10: memref<1x2x8xf32, #tpu.memory_space<vmem>>, %arg11: memref<10x10x8xf32, #tpu.memory_space<vmem>>) attributes {dimension_semantics = [#tpu.dimension_semantics<parallel>], iteration_bounds = array<i64: 2>, scalar_prefetch = 0 : i64, scratch_operands = 1 : i64, tpu.core_type = #tpu.core_type<tc>, window_params = [{transform_indices = @transform_0, window_bounds = array<i64: 1, 8, 8, 8>}, {pipeline_mode = #tpu.pipeline_mode<synchronous>, transform_indices = @transform_1, window_bounds = array<i64: 2, 2, 8>}, {pipeline_mode = #tpu.pipeline_mode<synchronous>, transform_indices = @transform_2, window_bounds = array<i64: 1, 8>}, {pipeline_mode = #tpu.pipeline_mode<synchronous>, transform_indices = @transform_3, window_bounds = array<i64: 1, 8>}, {pipeline_mode = #tpu.pipeline_mode<synchronous>, transform_indices = @transform_4, window_bounds = array<i64: 9, 8>}, {pipeline_mode = #tpu.pipeline_mode<synchronous>, transform_indices = @transform_5, window_bounds = array<i64: 1, 8>}, {pipeline_mode = #tpu.pipeline_mode<synchronous>, transform_indices = @transform_6, window_bounds = array<i64: 8, 8>}, {pipeline_mode = #tpu.pipeline_mode<synchronous>, transform_indices = @transform_7, window_bounds = array<i64: 1, 8>}, {transform_indices = @transform_8, window_bounds = array<i64: 1, 8, 8, 8>}, {transform_indices = @transform_9, window_bounds = array<i64: 1, 2, 8>}]} {
    %c0 = arith.constant 0 : index
    %c0_0 = arith.constant 0 : index
    %c0_1 = arith.constant 0 : index
    %0 = vector.load %arg2[%c0, %c0_0, %c0_1] : memref<2x2x8xf32, #tpu.memory_space<vmem>>, vector<2x2x8xf32>
    %c0_2 = arith.constant 0 : index
    %c0_3 = arith.constant 0 : index
    %1 = vector.load %arg3[%c0_2, %c0_3] : memref<1x8xf32, #tpu.memory_space<vmem>>, vector<1x8xf32>
    %c0_4 = arith.constant 0 : index
    %c0_5 = arith.constant 0 : index
    %2 = vector.load %arg4[%c0_4, %c0_5] : memref<1x8xf32, #tpu.memory_space<vmem>>, vector<1x8xf32>
    %cst = arith.constant dense<0.000000e+00> : vector<2x8xf32>
    %3 = vector.multi_reduction <add>, %0, %cst [0] : vector<2x2x8xf32> to vector<2x8xf32>
    %4 = vector.extract_strided_slice %3 {offsets = [0, 0], sizes = [1, 8], strides = [1, 1]} : vector<2x8xf32> to vector<1x8xf32>
    %cst_6 = arith.constant 7.812500e-03 : f32
    %5 = vector.broadcast %cst_6 : f32 to vector<1x8xf32>
    %6 = arith.mulf %4, %5 : vector<1x8xf32>
    %7 = vector.extract_strided_slice %3 {offsets = [1, 0], sizes = [1, 8], strides = [1, 1]} : vector<2x8xf32> to vector<1x8xf32>
    %cst_7 = arith.constant 7.812500e-03 : f32
    %8 = vector.broadcast %cst_7 : f32 to vector<1x8xf32>
    %9 = arith.mulf %7, %8 : vector<1x8xf32>
    %10 = arith.mulf %6, %6 : vector<1x8xf32>
    %11 = arith.subf %9, %10 : vector<1x8xf32>
    %cst_8 = arith.constant 0.000000e+00 : f32
    %12 = vector.broadcast %cst_8 : f32 to vector<1x8xf32>
    %13 = arith.maximumf %11, %12 : vector<1x8xf32>
    %cst_9 = arith.constant 9.99999974E-6 : f32
    %14 = vector.broadcast %cst_9 : f32 to vector<1x8xf32>
    %15 = arith.addf %13, %14 : vector<1x8xf32>
    %16 = math.rsqrt %15 : vector<1x8xf32>
    %17 = arith.mulf %1, %16 : vector<1x8xf32>
    %18 = arith.mulf %6, %17 : vector<1x8xf32>
    %19 = arith.subf %2, %18 : vector<1x8xf32>
    %c0_10 = arith.constant 0 : index
    %c0_11 = arith.constant 0 : index
    %c0_12 = arith.constant 0 : index
    %c0_13 = arith.constant 0 : index
    %20 = vector.load %arg1[%c0_10, %c0_11, %c0_12, %c0_13] : memref<1x8x8x8xf32, #tpu.memory_space<vmem>>, vector<1x8x8x8xf32>
    %21 = vector.shape_cast %20 : vector<1x8x8x8xf32> to vector<8x8x8xf32>
    %22 = vector.shape_cast %17 : vector<1x8xf32> to vector<1x1x8xf32>
    %23 = vector.broadcast %22 : vector<1x1x8xf32> to vector<8x8x8xf32>
    %24 = arith.mulf %21, %23 : vector<8x8x8xf32>
    %25 = vector.shape_cast %19 : vector<1x8xf32> to vector<1x1x8xf32>
    %26 = vector.broadcast %25 : vector<1x1x8xf32> to vector<8x8x8xf32>
    %27 = arith.addf %24, %26 : vector<8x8x8xf32>
    %cst_14 = arith.constant 0.000000e+00 : f32
    %28 = vector.broadcast %cst_14 : f32 to vector<8x8x8xf32>
    %29 = arith.maximumf %27, %28 : vector<8x8x8xf32>
    %cst_15 = arith.constant 0.000000e+00 : f32
    %30 = vector.broadcast %cst_15 : f32 to vector<1x10x8xf32>
    %c0_16 = arith.constant 0 : index
    %c0_17 = arith.constant 0 : index
    %c0_18 = arith.constant 0 : index
    %31 = vector.load %arg11[%c0_16, %c0_17, %c0_18] : memref<10x10x8xf32, #tpu.memory_space<vmem>>, vector<1x10x8xf32>
    tpu.vector_store %arg11[%c0_16, %c0_17, %c0_18], %30 {strides = array<i32>} : memref<10x10x8xf32, #tpu.memory_space<vmem>>, vector<1x10x8xf32>,
    %cst_19 = arith.constant 0.000000e+00 : f32
    %32 = vector.broadcast %cst_19 : f32 to vector<1x10x8xf32>
    %c9 = arith.constant 9 : index
    %c0_20 = arith.constant 0 : index
    %c0_21 = arith.constant 0 : index
    %33 = vector.load %arg11[%c9, %c0_20, %c0_21] : memref<10x10x8xf32, #tpu.memory_space<vmem>>, vector<1x10x8xf32>
    tpu.vector_store %arg11[%c9, %c0_20, %c0_21], %32 {strides = array<i32>} : memref<10x10x8xf32, #tpu.memory_space<vmem>>, vector<1x10x8xf32>,
    %cst_22 = arith.constant 0.000000e+00 : f32
    %34 = vector.broadcast %cst_22 : f32 to vector<10x1x8xf32>
    %c0_23 = arith.constant 0 : index
    %c0_24 = arith.constant 0 : index
    %c0_25 = arith.constant 0 : index
    %35 = vector.load %arg11[%c0_23, %c0_24, %c0_25] : memref<10x10x8xf32, #tpu.memory_space<vmem>>, vector<10x1x8xf32>
    tpu.vector_store %arg11[%c0_23, %c0_24, %c0_25], %34 {strides = array<i32>} : memref<10x10x8xf32, #tpu.memory_space<vmem>>, vector<10x1x8xf32>,
    %cst_26 = arith.constant 0.000000e+00 : f32
    %36 = vector.broadcast %cst_26 : f32 to vector<10x1x8xf32>
    %c0_27 = arith.constant 0 : index
    %c9_28 = arith.constant 9 : index
    %c0_29 = arith.constant 0 : index
    %37 = vector.load %arg11[%c0_27, %c9_28, %c0_29] : memref<10x10x8xf32, #tpu.memory_space<vmem>>, vector<10x1x8xf32>
    tpu.vector_store %arg11[%c0_27, %c9_28, %c0_29], %36 {strides = array<i32>} : memref<10x10x8xf32, #tpu.memory_space<vmem>>, vector<10x1x8xf32>,
    %c1 = arith.constant 1 : index
    %c1_30 = arith.constant 1 : index
    %c0_31 = arith.constant 0 : index
    %38 = vector.load %arg11[%c1, %c1_30, %c0_31] : memref<10x10x8xf32, #tpu.memory_space<vmem>>, vector<8x8x8xf32>
    tpu.vector_store %arg11[%c1, %c1_30, %c0_31], %29 {strides = array<i32>} : memref<10x10x8xf32, #tpu.memory_space<vmem>>, vector<8x8x8xf32>,
    %c0_32 = arith.constant 0 : index
    %c0_33 = arith.constant 0 : index
    %39 = vector.load %arg5[%c0_32, %c0_33] : memref<9x8xf32, #tpu.memory_space<vmem>>, vector<9x8xf32>
    %c0_34 = arith.constant 0 : index
    %c0_35 = arith.constant 0 : index
    %c0_36 = arith.constant 0 : index
    %40 = vector.load %arg11[%c0_34, %c0_35, %c0_36] : memref<10x10x8xf32, #tpu.memory_space<vmem>>, vector<8x8x8xf32>
    %41 = vector.extract_strided_slice %39 {offsets = [0, 0], sizes = [1, 8], strides = [1, 1]} : vector<9x8xf32> to vector<1x8xf32>
    %42 = vector.shape_cast %41 : vector<1x8xf32> to vector<1x1x8xf32>
    %43 = vector.broadcast %42 : vector<1x1x8xf32> to vector<8x8x8xf32>
    %44 = arith.mulf %40, %43 : vector<8x8x8xf32>
    %c0_37 = arith.constant 0 : index
    %c1_38 = arith.constant 1 : index
    %c0_39 = arith.constant 0 : index
    %45 = vector.load %arg11[%c0_37, %c1_38, %c0_39] : memref<10x10x8xf32, #tpu.memory_space<vmem>>, vector<8x8x8xf32>
    %46 = vector.extract_strided_slice %39 {offsets = [1, 0], sizes = [1, 8], strides = [1, 1]} : vector<9x8xf32> to vector<1x8xf32>
    %47 = vector.shape_cast %46 : vector<1x8xf32> to vector<1x1x8xf32>
    %48 = vector.broadcast %47 : vector<1x1x8xf32> to vector<8x8x8xf32>
    %49 = arith.mulf %45, %48 : vector<8x8x8xf32>
    %50 = arith.addf %44, %49 : vector<8x8x8xf32>
    %c0_40 = arith.constant 0 : index
    %c2 = arith.constant 2 : index
    %c0_41 = arith.constant 0 : index
    %51 = vector.load %arg11[%c0_40, %c2, %c0_41] : memref<10x10x8xf32, #tpu.memory_space<vmem>>, vector<8x8x8xf32>
    %52 = vector.extract_strided_slice %39 {offsets = [2, 0], sizes = [1, 8], strides = [1, 1]} : vector<9x8xf32> to vector<1x8xf32>
    %53 = vector.shape_cast %52 : vector<1x8xf32> to vector<1x1x8xf32>
    %54 = vector.broadcast %53 : vector<1x1x8xf32> to vector<8x8x8xf32>
    %55 = arith.mulf %51, %54 : vector<8x8x8xf32>
    %56 = arith.addf %50, %55 : vector<8x8x8xf32>
    %c1_42 = arith.constant 1 : index
    %c0_43 = arith.constant 0 : index
    %c0_44 = arith.constant 0 : index
    %57 = vector.load %arg11[%c1_42, %c0_43, %c0_44] : memref<10x10x8xf32, #tpu.memory_space<vmem>>, vector<8x8x8xf32>
    %58 = vector.extract_strided_slice %39 {offsets = [3, 0], sizes = [1, 8], strides = [1, 1]} : vector<9x8xf32> to vector<1x8xf32>
    %59 = vector.shape_cast %58 : vector<1x8xf32> to vector<1x1x8xf32>
    %60 = vector.broadcast %59 : vector<1x1x8xf32> to vector<8x8x8xf32>
    %61 = arith.mulf %57, %60 : vector<8x8x8xf32>
    %62 = arith.addf %56, %61 : vector<8x8x8xf32>
    %c1_45 = arith.constant 1 : index
    %c1_46 = arith.constant 1 : index
    %c0_47 = arith.constant 0 : index
    %63 = vector.load %arg11[%c1_45, %c1_46, %c0_47] : memref<10x10x8xf32, #tpu.memory_space<vmem>>, vector<8x8x8xf32>
    %64 = vector.extract_strided_slice %39 {offsets = [4, 0], sizes = [1, 8], strides = [1, 1]} : vector<9x8xf32> to vector<1x8xf32>
    %65 = vector.shape_cast %64 : vector<1x8xf32> to vector<1x1x8xf32>
    %66 = vector.broadcast %65 : vector<1x1x8xf32> to vector<8x8x8xf32>
    %67 = arith.mulf %63, %66 : vector<8x8x8xf32>
    %68 = arith.addf %62, %67 : vector<8x8x8xf32>
    %c1_48 = arith.constant 1 : index
    %c2_49 = arith.constant 2 : index
    %c0_50 = arith.constant 0 : index
    %69 = vector.load %arg11[%c1_48, %c2_49, %c0_50] : memref<10x10x8xf32, #tpu.memory_space<vmem>>, vector<8x8x8xf32>
    %70 = vector.extract_strided_slice %39 {offsets = [5, 0], sizes = [1, 8], strides = [1, 1]} : vector<9x8xf32> to vector<1x8xf32>
    %71 = vector.shape_cast %70 : vector<1x8xf32> to vector<1x1x8xf32>
    %72 = vector.broadcast %71 : vector<1x1x8xf32> to vector<8x8x8xf32>
    %73 = arith.mulf %69, %72 : vector<8x8x8xf32>
    %74 = arith.addf %68, %73 : vector<8x8x8xf32>
    %c2_51 = arith.constant 2 : index
    %c0_52 = arith.constant 0 : index
    %c0_53 = arith.constant 0 : index
    %75 = vector.load %arg11[%c2_51, %c0_52, %c0_53] : memref<10x10x8xf32, #tpu.memory_space<vmem>>, vector<8x8x8xf32>
    %76 = vector.extract_strided_slice %39 {offsets = [6, 0], sizes = [1, 8], strides = [1, 1]} : vector<9x8xf32> to vector<1x8xf32>
    %77 = vector.shape_cast %76 : vector<1x8xf32> to vector<1x1x8xf32>
    %78 = vector.broadcast %77 : vector<1x1x8xf32> to vector<8x8x8xf32>
    %79 = arith.mulf %75, %78 : vector<8x8x8xf32>
    %80 = arith.addf %74, %79 : vector<8x8x8xf32>
    %c2_54 = arith.constant 2 : index
    %c1_55 = arith.constant 1 : index
    %c0_56 = arith.constant 0 : index
    %81 = vector.load %arg11[%c2_54, %c1_55, %c0_56] : memref<10x10x8xf32, #tpu.memory_space<vmem>>, vector<8x8x8xf32>
    %82 = vector.extract_strided_slice %39 {offsets = [7, 0], sizes = [1, 8], strides = [1, 1]} : vector<9x8xf32> to vector<1x8xf32>
    %83 = vector.shape_cast %82 : vector<1x8xf32> to vector<1x1x8xf32>
    %84 = vector.broadcast %83 : vector<1x1x8xf32> to vector<8x8x8xf32>
    %85 = arith.mulf %81, %84 : vector<8x8x8xf32>
    %86 = arith.addf %80, %85 : vector<8x8x8xf32>
    %c2_57 = arith.constant 2 : index
    %c2_58 = arith.constant 2 : index
    %c0_59 = arith.constant 0 : index
    %87 = vector.load %arg11[%c2_57, %c2_58, %c0_59] : memref<10x10x8xf32, #tpu.memory_space<vmem>>, vector<8x8x8xf32>
    %88 = vector.extract_strided_slice %39 {offsets = [8, 0], sizes = [1, 8], strides = [1, 1]} : vector<9x8xf32> to vector<1x8xf32>
    %89 = vector.shape_cast %88 : vector<1x8xf32> to vector<1x1x8xf32>
    %90 = vector.broadcast %89 : vector<1x1x8xf32> to vector<8x8x8xf32>
    %91 = arith.mulf %87, %90 : vector<8x8x8xf32>
    %92 = arith.addf %86, %91 : vector<8x8x8xf32>
    %c0_60 = arith.constant 0 : index
    %c0_61 = arith.constant 0 : index
    %93 = vector.load %arg6[%c0_60, %c0_61] : memref<1x8xf32, #tpu.memory_space<vmem>>, vector<1x8xf32>
    %94 = vector.shape_cast %93 : vector<1x8xf32> to vector<1x1x8xf32>
    %95 = vector.broadcast %94 : vector<1x1x8xf32> to vector<8x8x8xf32>
    %96 = arith.addf %92, %95 : vector<8x8x8xf32>
    %97 = vector.shape_cast %96 : vector<8x8x8xf32> to vector<64x8xf32>
    %c0_62 = arith.constant 0 : index
    %c0_63 = arith.constant 0 : index
    %98 = vector.load %arg7[%c0_62, %c0_63] : memref<8x8xf32, #tpu.memory_space<vmem>>, vector<8x8xf32>
    %cst_64 = arith.constant dense<0.000000e+00> : vector<64x8xf32>
    %99 = tpu.matmul %97, %98, %cst_64 {dimension_numbers = #tpu.dot_dimension_numbers<[1], [0], [0], [1], [0, 0, 1, 1], [], []>} : vector<64x8xf32>, vector<8x8xf32>, vector<64x8xf32> -> vector<64x8xf32>
    %c0_65 = arith.constant 0 : index
    %c0_66 = arith.constant 0 : index
    %100 = vector.load %arg8[%c0_65, %c0_66] : memref<1x8xf32, #tpu.memory_space<vmem>>, vector<1x8xf32>
    %101 = vector.broadcast %100 : vector<1x8xf32> to vector<64x8xf32>
    %102 = arith.addf %99, %101 : vector<64x8xf32>
    %cst_67 = arith.constant dense<0.000000e+00> : vector<8xf32>
    %103 = vector.multi_reduction <add>, %102, %cst_67 [0] : vector<64x8xf32> to vector<8xf32>
    %104 = vector.shape_cast %103 : vector<8xf32> to vector<1x8xf32>
    %105 = vector.shape_cast %104 : vector<1x8xf32> to vector<1x1x8xf32>
    %c0_68 = arith.constant 0 : index
    %c0_69 = arith.constant 0 : index
    %c0_70 = arith.constant 0 : index
    %106 = vector.load %arg10[%c0_68, %c0_69, %c0_70] : memref<1x2x8xf32, #tpu.memory_space<vmem>>, vector<1x1x8xf32>
    tpu.vector_store %arg10[%c0_68, %c0_69, %c0_70], %105 {strides = array<i32>} : memref<1x2x8xf32, #tpu.memory_space<vmem>>, vector<1x1x8xf32>,
    %107 = arith.mulf %102, %102 : vector<64x8xf32>
    %cst_71 = arith.constant dense<0.000000e+00> : vector<8xf32>
    %108 = vector.multi_reduction <add>, %107, %cst_71 [0] : vector<64x8xf32> to vector<8xf32>
    %109 = vector.shape_cast %108 : vector<8xf32> to vector<1x8xf32>
    %110 = vector.shape_cast %109 : vector<1x8xf32> to vector<1x1x8xf32>
    %c0_72 = arith.constant 0 : index
    %c1_73 = arith.constant 1 : index
    %c0_74 = arith.constant 0 : index
    %111 = vector.load %arg10[%c0_72, %c1_73, %c0_74] : memref<1x2x8xf32, #tpu.memory_space<vmem>>, vector<1x1x8xf32>
    tpu.vector_store %arg10[%c0_72, %c1_73, %c0_74], %110 {strides = array<i32>} : memref<1x2x8xf32, #tpu.memory_space<vmem>>, vector<1x1x8xf32>,
    %112 = vector.shape_cast %102 : vector<64x8xf32> to vector<1x8x8x8xf32>
    %c0_75 = arith.constant 0 : index
    %c0_76 = arith.constant 0 : index
    %c0_77 = arith.constant 0 : index
    %c0_78 = arith.constant 0 : index
    %113 = vector.load %arg9[%c0_75, %c0_76, %c0_77, %c0_78] : memref<1x8x8x8xf32, #tpu.memory_space<vmem>>, vector<1x8x8x8xf32>
    tpu.vector_store %arg9[%c0_75, %c0_76, %c0_77, %c0_78], %112 {strides = array<i32>} : memref<1x8x8x8xf32, #tpu.memory_space<vmem>>, vector<1x8x8x8xf32>,
    return
  }
  func.func @transform_0(%arg0: i32) -> (i32, i32, i32, i32) {
    %c0_i32 = arith.constant 0 : i32
    %c0_i32_0 = arith.constant 0 : i32
    %c0_i32_1 = arith.constant 0 : i32
    %c0_i32_2 = arith.constant 0 : i32
    return %arg0, %c0_i32, %c0_i32_0, %c0_i32_1 : i32, i32, i32, i32
  }
  func.func @transform_1(%arg0: i32) -> (i32, i32, i32) {
    %c0_i32 = arith.constant 0 : i32
    %c0_i32_0 = arith.constant 0 : i32
    %c0_i32_1 = arith.constant 0 : i32
    %c0_i32_2 = arith.constant 0 : i32
    return %c0_i32, %c0_i32_0, %c0_i32_1 : i32, i32, i32
  }
  func.func @transform_2(%arg0: i32) -> (i32, i32) {
    %c0_i32 = arith.constant 0 : i32
    %c0_i32_0 = arith.constant 0 : i32
    %c0_i32_1 = arith.constant 0 : i32
    return %c0_i32, %c0_i32_0 : i32, i32
  }
  func.func @transform_3(%arg0: i32) -> (i32, i32) {
    %c0_i32 = arith.constant 0 : i32
    %c0_i32_0 = arith.constant 0 : i32
    %c0_i32_1 = arith.constant 0 : i32
    return %c0_i32, %c0_i32_0 : i32, i32
  }
  func.func @transform_4(%arg0: i32) -> (i32, i32) {
    %c0_i32 = arith.constant 0 : i32
    %c0_i32_0 = arith.constant 0 : i32
    %c0_i32_1 = arith.constant 0 : i32
    return %c0_i32, %c0_i32_0 : i32, i32
  }
  func.func @transform_5(%arg0: i32) -> (i32, i32) {
    %c0_i32 = arith.constant 0 : i32
    %c0_i32_0 = arith.constant 0 : i32
    %c0_i32_1 = arith.constant 0 : i32
    return %c0_i32, %c0_i32_0 : i32, i32
  }
  func.func @transform_6(%arg0: i32) -> (i32, i32) {
    %c0_i32 = arith.constant 0 : i32
    %c0_i32_0 = arith.constant 0 : i32
    %c0_i32_1 = arith.constant 0 : i32
    return %c0_i32, %c0_i32_0 : i32, i32
  }
  func.func @transform_7(%arg0: i32) -> (i32, i32) {
    %c0_i32 = arith.constant 0 : i32
    %c0_i32_0 = arith.constant 0 : i32
    %c0_i32_1 = arith.constant 0 : i32
    return %c0_i32, %c0_i32_0 : i32, i32
  }
  func.func @transform_8(%arg0: i32) -> (i32, i32, i32, i32) {
    %c0_i32 = arith.constant 0 : i32
    %c0_i32_0 = arith.constant 0 : i32
    %c0_i32_1 = arith.constant 0 : i32
    %c0_i32_2 = arith.constant 0 : i32
    return %arg0, %c0_i32, %c0_i32_0, %c0_i32_1 : i32, i32, i32, i32
  }
  func.func @transform_9(%arg0: i32) -> (i32, i32, i32) {
    %c0_i32 = arith.constant 0 : i32
    %c0_i32_0 = arith.constant 0 : i32
    %c0_i32_1 = arith.constant 0 : i32
    return %arg0, %c0_i32, %c0_i32_0 : i32, i32, i32
  }
}

module attributes {stable_mosaic.version = 11 : i64} {
  func.func @kernel(%arg0: i32, %arg1: memref<1x8x8x8xf32, #tpu.memory_space<vmem>>, %arg2: memref<2x2x8xf32, #tpu.memory_space<vmem>>, %arg3: memref<1x8xf32, #tpu.memory_space<vmem>>, %arg4: memref<1x8xf32, #tpu.memory_space<vmem>>, %arg5: memref<1x8x8x8xf32, #tpu.memory_space<vmem>>, %arg6: memref<2x2x8xf32, #tpu.memory_space<vmem>>, %arg7: memref<1x8xf32, #tpu.memory_space<vmem>>, %arg8: memref<1x8xf32, #tpu.memory_space<vmem>>, %arg9: memref<1x8x8x8xf32, #tpu.memory_space<vmem>>) attributes {dimension_semantics = [#tpu.dimension_semantics<parallel>], iteration_bounds = array<i64: 2>, scalar_prefetch = 0 : i64, scratch_operands = 0 : i64, tpu.core_type = #tpu.core_type<tc>, window_params = [{transform_indices = @transform_0, window_bounds = array<i64: 1, 8, 8, 8>}, {pipeline_mode = #tpu.pipeline_mode<synchronous>, transform_indices = @transform_1, window_bounds = array<i64: 2, 2, 8>}, {pipeline_mode = #tpu.pipeline_mode<synchronous>, transform_indices = @transform_2, window_bounds = array<i64: 1, 8>}, {pipeline_mode = #tpu.pipeline_mode<synchronous>, transform_indices = @transform_3, window_bounds = array<i64: 1, 8>}, {transform_indices = @transform_4, window_bounds = array<i64: 1, 8, 8, 8>}, {pipeline_mode = #tpu.pipeline_mode<synchronous>, transform_indices = @transform_5, window_bounds = array<i64: 2, 2, 8>}, {pipeline_mode = #tpu.pipeline_mode<synchronous>, transform_indices = @transform_6, window_bounds = array<i64: 1, 8>}, {pipeline_mode = #tpu.pipeline_mode<synchronous>, transform_indices = @transform_7, window_bounds = array<i64: 1, 8>}, {transform_indices = @transform_8, window_bounds = array<i64: 1, 8, 8, 8>}]} {
    %c0 = arith.constant 0 : index
    %c0_0 = arith.constant 0 : index
    %c0_1 = arith.constant 0 : index
    %0 = vector.load %arg2[%c0, %c0_0, %c0_1] : memref<2x2x8xf32, #tpu.memory_space<vmem>>, vector<2x2x8xf32>
    %c0_2 = arith.constant 0 : index
    %c0_3 = arith.constant 0 : index
    %1 = vector.load %arg3[%c0_2, %c0_3] : memref<1x8xf32, #tpu.memory_space<vmem>>, vector<1x8xf32>
    %c0_4 = arith.constant 0 : index
    %c0_5 = arith.constant 0 : index
    %2 = vector.load %arg4[%c0_4, %c0_5] : memref<1x8xf32, #tpu.memory_space<vmem>>, vector<1x8xf32>
    %cst = arith.constant dense<0.000000e+00> : vector<2x8xf32>
    %3 = vector.multi_reduction <add>, %0, %cst [0] : vector<2x2x8xf32> to vector<2x8xf32>
    %4 = vector.extract_strided_slice %3 {offsets = [0, 0], sizes = [1, 8], strides = [1, 1]} : vector<2x8xf32> to vector<1x8xf32>
    %cst_6 = arith.constant 7.812500e-03 : f32
    %5 = vector.broadcast %cst_6 : f32 to vector<1x8xf32>
    %6 = arith.mulf %4, %5 : vector<1x8xf32>
    %7 = vector.extract_strided_slice %3 {offsets = [1, 0], sizes = [1, 8], strides = [1, 1]} : vector<2x8xf32> to vector<1x8xf32>
    %cst_7 = arith.constant 7.812500e-03 : f32
    %8 = vector.broadcast %cst_7 : f32 to vector<1x8xf32>
    %9 = arith.mulf %7, %8 : vector<1x8xf32>
    %10 = arith.mulf %6, %6 : vector<1x8xf32>
    %11 = arith.subf %9, %10 : vector<1x8xf32>
    %cst_8 = arith.constant 0.000000e+00 : f32
    %12 = vector.broadcast %cst_8 : f32 to vector<1x8xf32>
    %13 = arith.maximumf %11, %12 : vector<1x8xf32>
    %cst_9 = arith.constant 9.99999974E-6 : f32
    %14 = vector.broadcast %cst_9 : f32 to vector<1x8xf32>
    %15 = arith.addf %13, %14 : vector<1x8xf32>
    %16 = math.rsqrt %15 : vector<1x8xf32>
    %17 = arith.mulf %1, %16 : vector<1x8xf32>
    %18 = arith.mulf %6, %17 : vector<1x8xf32>
    %19 = arith.subf %2, %18 : vector<1x8xf32>
    %c0_10 = arith.constant 0 : index
    %c0_11 = arith.constant 0 : index
    %c0_12 = arith.constant 0 : index
    %c0_13 = arith.constant 0 : index
    %20 = vector.load %arg1[%c0_10, %c0_11, %c0_12, %c0_13] : memref<1x8x8x8xf32, #tpu.memory_space<vmem>>, vector<1x8x8x8xf32>
    %21 = vector.shape_cast %20 : vector<1x8x8x8xf32> to vector<8x8x8xf32>
    %22 = vector.shape_cast %17 : vector<1x8xf32> to vector<1x1x8xf32>
    %23 = vector.broadcast %22 : vector<1x1x8xf32> to vector<8x8x8xf32>
    %24 = arith.mulf %21, %23 : vector<8x8x8xf32>
    %25 = vector.shape_cast %19 : vector<1x8xf32> to vector<1x1x8xf32>
    %26 = vector.broadcast %25 : vector<1x1x8xf32> to vector<8x8x8xf32>
    %27 = arith.addf %24, %26 : vector<8x8x8xf32>
    %c0_14 = arith.constant 0 : index
    %c0_15 = arith.constant 0 : index
    %c0_16 = arith.constant 0 : index
    %28 = vector.load %arg6[%c0_14, %c0_15, %c0_16] : memref<2x2x8xf32, #tpu.memory_space<vmem>>, vector<2x2x8xf32>
    %c0_17 = arith.constant 0 : index
    %c0_18 = arith.constant 0 : index
    %29 = vector.load %arg7[%c0_17, %c0_18] : memref<1x8xf32, #tpu.memory_space<vmem>>, vector<1x8xf32>
    %c0_19 = arith.constant 0 : index
    %c0_20 = arith.constant 0 : index
    %30 = vector.load %arg8[%c0_19, %c0_20] : memref<1x8xf32, #tpu.memory_space<vmem>>, vector<1x8xf32>
    %cst_21 = arith.constant dense<0.000000e+00> : vector<2x8xf32>
    %31 = vector.multi_reduction <add>, %28, %cst_21 [0] : vector<2x2x8xf32> to vector<2x8xf32>
    %32 = vector.extract_strided_slice %31 {offsets = [0, 0], sizes = [1, 8], strides = [1, 1]} : vector<2x8xf32> to vector<1x8xf32>
    %cst_22 = arith.constant 7.812500e-03 : f32
    %33 = vector.broadcast %cst_22 : f32 to vector<1x8xf32>
    %34 = arith.mulf %32, %33 : vector<1x8xf32>
    %35 = vector.extract_strided_slice %31 {offsets = [1, 0], sizes = [1, 8], strides = [1, 1]} : vector<2x8xf32> to vector<1x8xf32>
    %cst_23 = arith.constant 7.812500e-03 : f32
    %36 = vector.broadcast %cst_23 : f32 to vector<1x8xf32>
    %37 = arith.mulf %35, %36 : vector<1x8xf32>
    %38 = arith.mulf %34, %34 : vector<1x8xf32>
    %39 = arith.subf %37, %38 : vector<1x8xf32>
    %cst_24 = arith.constant 0.000000e+00 : f32
    %40 = vector.broadcast %cst_24 : f32 to vector<1x8xf32>
    %41 = arith.maximumf %39, %40 : vector<1x8xf32>
    %cst_25 = arith.constant 9.99999974E-6 : f32
    %42 = vector.broadcast %cst_25 : f32 to vector<1x8xf32>
    %43 = arith.addf %41, %42 : vector<1x8xf32>
    %44 = math.rsqrt %43 : vector<1x8xf32>
    %45 = arith.mulf %29, %44 : vector<1x8xf32>
    %46 = arith.mulf %34, %45 : vector<1x8xf32>
    %47 = arith.subf %30, %46 : vector<1x8xf32>
    %c0_26 = arith.constant 0 : index
    %c0_27 = arith.constant 0 : index
    %c0_28 = arith.constant 0 : index
    %c0_29 = arith.constant 0 : index
    %48 = vector.load %arg5[%c0_26, %c0_27, %c0_28, %c0_29] : memref<1x8x8x8xf32, #tpu.memory_space<vmem>>, vector<1x8x8x8xf32>
    %49 = vector.shape_cast %48 : vector<1x8x8x8xf32> to vector<8x8x8xf32>
    %50 = vector.shape_cast %45 : vector<1x8xf32> to vector<1x1x8xf32>
    %51 = vector.broadcast %50 : vector<1x1x8xf32> to vector<8x8x8xf32>
    %52 = arith.mulf %49, %51 : vector<8x8x8xf32>
    %53 = vector.shape_cast %47 : vector<1x8xf32> to vector<1x1x8xf32>
    %54 = vector.broadcast %53 : vector<1x1x8xf32> to vector<8x8x8xf32>
    %55 = arith.addf %52, %54 : vector<8x8x8xf32>
    %56 = arith.addf %27, %55 : vector<8x8x8xf32>
    %cst_30 = arith.constant 5.000000e-01 : f32
    %57 = vector.broadcast %cst_30 : f32 to vector<8x8x8xf32>
    %58 = arith.mulf %56, %57 : vector<8x8x8xf32>
    %59 = vector.shape_cast %58 : vector<8x8x8xf32> to vector<1x8x8x8xf32>
    %c0_31 = arith.constant 0 : index
    %c0_32 = arith.constant 0 : index
    %c0_33 = arith.constant 0 : index
    %c0_34 = arith.constant 0 : index
    %60 = vector.load %arg9[%c0_31, %c0_32, %c0_33, %c0_34] : memref<1x8x8x8xf32, #tpu.memory_space<vmem>>, vector<1x8x8x8xf32>
    tpu.vector_store %arg9[%c0_31, %c0_32, %c0_33, %c0_34], %59 {strides = array<i32>} : memref<1x8x8x8xf32, #tpu.memory_space<vmem>>, vector<1x8x8x8xf32>,
    return
  }
  func.func @transform_0(%arg0: i32) -> (i32, i32, i32, i32) {
    %c0_i32 = arith.constant 0 : i32
    %c0_i32_0 = arith.constant 0 : i32
    %c0_i32_1 = arith.constant 0 : i32
    %c0_i32_2 = arith.constant 0 : i32
    return %arg0, %c0_i32, %c0_i32_0, %c0_i32_1 : i32, i32, i32, i32
  }
  func.func @transform_1(%arg0: i32) -> (i32, i32, i32) {
    %c0_i32 = arith.constant 0 : i32
    %c0_i32_0 = arith.constant 0 : i32
    %c0_i32_1 = arith.constant 0 : i32
    %c0_i32_2 = arith.constant 0 : i32
    return %c0_i32, %c0_i32_0, %c0_i32_1 : i32, i32, i32
  }
  func.func @transform_2(%arg0: i32) -> (i32, i32) {
    %c0_i32 = arith.constant 0 : i32
    %c0_i32_0 = arith.constant 0 : i32
    %c0_i32_1 = arith.constant 0 : i32
    return %c0_i32, %c0_i32_0 : i32, i32
  }
  func.func @transform_3(%arg0: i32) -> (i32, i32) {
    %c0_i32 = arith.constant 0 : i32
    %c0_i32_0 = arith.constant 0 : i32
    %c0_i32_1 = arith.constant 0 : i32
    return %c0_i32, %c0_i32_0 : i32, i32
  }
  func.func @transform_4(%arg0: i32) -> (i32, i32, i32, i32) {
    %c0_i32 = arith.constant 0 : i32
    %c0_i32_0 = arith.constant 0 : i32
    %c0_i32_1 = arith.constant 0 : i32
    %c0_i32_2 = arith.constant 0 : i32
    return %arg0, %c0_i32, %c0_i32_0, %c0_i32_1 : i32, i32, i32, i32
  }
  func.func @transform_5(%arg0: i32) -> (i32, i32, i32) {
    %c0_i32 = arith.constant 0 : i32
    %c0_i32_0 = arith.constant 0 : i32
    %c0_i32_1 = arith.constant 0 : i32
    %c0_i32_2 = arith.constant 0 : i32
    return %c0_i32, %c0_i32_0, %c0_i32_1 : i32, i32, i32
  }
  func.func @transform_6(%arg0: i32) -> (i32, i32) {
    %c0_i32 = arith.constant 0 : i32
    %c0_i32_0 = arith.constant 0 : i32
    %c0_i32_1 = arith.constant 0 : i32
    return %c0_i32, %c0_i32_0 : i32, i32
  }
  func.func @transform_7(%arg0: i32) -> (i32, i32) {
    %c0_i32 = arith.constant 0 : i32
    %c0_i32_0 = arith.constant 0 : i32
    %c0_i32_1 = arith.constant 0 : i32
    return %c0_i32, %c0_i32_0 : i32, i32
  }
  func.func @transform_8(%arg0: i32) -> (i32, i32, i32, i32) {
    %c0_i32 = arith.constant 0 : i32
    %c0_i32_0 = arith.constant 0 : i32
    %c0_i32_1 = arith.constant 0 : i32
    %c0_i32_2 = arith.constant 0 : i32
    return %arg0, %c0_i32, %c0_i32_0, %c0_i32_1 : i32, i32, i32, i32
  }
}

</mosaic_0001>

<bundles_post_ra>
// kernel: _lambda_.8
= control target key start
LH: loop header
LB: loop body
LE: loop exit
PB: predicated region body
PF: predicated region fallthrough
CT: control target
= control target key end

     0   :  { %s1128_s30 = smov 0   ;;  %s1386_s0 = inlined_call_operand.vmem [shape: f32[2,8,8,8], index: 0, kind: input, shape index: {}]   ;;  %s1387_s1 = inlined_call_operand.vmem [shape: f32[2,2,8], index: 1, kind: input, shape index: {}]   ;;  %s1388_s2 = inlined_call_operand.vmem [shape: f32[1,8], index: 2, kind: input, shape index: {}]   ;;  %s1389_s3 = inlined_call_operand.vmem [shape: f32[1,8], index: 3, kind: input, shape index: {}]   ;;  %s1390_s4 = inlined_call_operand.vmem [shape: f32[9,8], index: 4, kind: input, shape index: {}]   ;;  %s1391_s5 = inlined_call_operand.vmem [shape: f32[1,8], index: 5, kind: input, shape index: {}]   ;;  %s1392_s6 = inlined_call_operand.vmem [shape: f32[8,8], index: 6, kind: input, shape index: {}]   ;;  %s1393_s7 = inlined_call_operand.vmem [shape: f32[1,8], index: 7, kind: input, shape index: {}]   ;;  %s1394_s8 = inlined_call_operand.vmem [shape: f32[2,8,8,8], index: 8, kind: output, shape index: {0}]   ;;  %s1395_s9 = inlined_call_operand.vmem [shape: f32[2,2,8], index: 9, kind: output, shape index: {1}]  }
   0x1 LB: > { %s1006_s10 = sadd.s32 4294967295, %s1074_s30   ;;  %p1010_p0 = scmp.ge.s32.totalorder %s1074_s30, 1  ;;  %s1074_s30 = sphi %s1128_s30, %s20_s30  }
   0x2   : > { %p290_p1 = scmp.lt.s32.totalorder %s1074_s30, 3 }
   0x4   : > { %p291_p2 = pnand %p1010_p0, %p290_p1 }
   0x5   : > { %v723_v0 = vld [vmem:[%s1392_s6] sm:$0xff] (!%p291_p2)  ;;  %vm348_vm0 = vcmask (!%p291_p2), 58368   ;;  %vm425_vm1 = vcmask (!%p291_p2), 64512   ;;  %vm431_vm2 = vcmask (!%p291_p2), 57344   ;;  %v1076_v6 = vmov (!%p291_p2), 0.0   ;;  %p330_p3 = scmp.lt.s32.totalorder (!%p291_p2), %s1006_s10, 1 }
   0x6   : > { %294 = sbr.rel (%p291_p2) target bundleno = 339 (0x153), region = 52  ;;  %v344_v1 = vld [vmem:[%s1387_s1] sm:$0x3] (!%p291_p2)  ;;  %v345_v2 = vld [vmem:[%s1387_s1 + $0x2] sm:$0x3] (!%p291_p2)  ;;  %1040 = vmatprep.subr.mxu0 (!%p291_p2), %v723_v0  ;;  %1054 = vmatprep.subr.mxu1 (!%p291_p2), %v723_v0  ;;  %426 = vst.msk [vmem:[#allocation2] sm:$0xff] (!%p291_p2), %vm425_vm1, %v1076_v6  ;;  %v365_v15 = vlaneseq (!%p291_p2) }
   0x7   : > { %1041 = vmatpush3.msra.mxu0 (!%p291_p2), %v723_v0  ;;  %v349_v3 = vsel (!%p291_p2), %vm348_vm0, %v344_v1, 0.0  ;;  %v350_v4 = vsel (!%p291_p2), %vm348_vm0, %v345_v2, 0.0  ;;  %1055 = vmatpush3.msra.mxu1 (!%p291_p2), %v723_v0  ;;  %427 = vst.msk [vmem:[#allocation2 + $0x8] sm:$0x3] (!%p291_p2), %vm348_vm0, %v1076_v6  ;;  %430 = vst.msk [vmem:[#allocation2 + $0x98] sm:$0x3] (!%p291_p2), %vm348_vm0, %v1076_v6 }
   0x8   : > { %v351_v5 = vadd.f32 (!%p291_p2), %v350_v4, %v349_v3  ;;  %433 = vst.msk [vmem:[#allocation2 + $0x10] sm:$0x1] (!%p291_p2), %vm431_vm2, %v1076_v6  ;;  %434 = vst.msk [vmem:[#allocation2 + $0x20] sm:$0x1] (!%p291_p2), %vm431_vm2, %v1076_v6  ;;  %v1077_v13 = vmov (!%p291_p2), 1966171168  }
   0x9   : > { %443 = vst.msk [vmem:[#allocation2 + $0x19] sm:$0x1] (!%p291_p2), %vm431_vm2, %v1076_v6  ;;  %444 = vst.msk [vmem:[#allocation2 + $0x29] sm:$0x1] (!%p291_p2), %vm431_vm2, %v1076_v6  ;;  %v363_v14 = vunpack.c.l.s4 (!%p291_p2), %v1077_v13  ;;  %v1173_v17 = vshrl.u32 (!%p291_p2), %v365_v15, 7  ;;  %v1197_v29 = vld [vmem:[%s1390_s4] sm:$0xff] (!%p291_p2) }
   0xa   : > { %429 = vst.msk [vmem:[#allocation2 + $0x90] sm:$0xff] (!%p291_p2), %vm425_vm1, %v1076_v6  ;;  %v352_v7 = vmul.f32 (!%p291_p2), 0.0078125, %v351_v5  ;;  %v346_v22 = vld [vmem:[%s1388_s2] sm:$0x1] (!%p291_p2) }
   0xb   : > { %435 = vst.msk [vmem:[#allocation2 + $0x30] sm:$0x1] (!%p291_p2), %vm431_vm2, %v1076_v6  ;;  %436 = vst.msk [vmem:[#allocation2 + $0x40] sm:$0x1] (!%p291_p2), %vm431_vm2, %v1076_v6  ;;  %v364_v16 = vunpack.c.0.s8 (!%p291_p2), %v363_v14  ;;  %v392_v24 = vsub.s32 (!%p291_p2), 0, %v1173_v17  ;;  %v493_v25 = vsub.s32 (!%p291_p2), 1, %v1173_v17 }
   0xc   : > { %437 = vst.msk [vmem:[#allocation2 + $0x50] sm:$0x1] (!%p291_p2), %vm431_vm2, %v1076_v6  ;;  %438 = vst.msk [vmem:[#allocation2 + $0x60] sm:$0x1] (!%p291_p2), %vm431_vm2, %v1076_v6  ;;  %v353_v8 = vmul.f32 (!%p291_p2), %v352_v7, %v352_v7  ;;  %v347_v26 = vld [vmem:[%s1389_s3] sm:$0x1] (!%p291_p2) }
   0xd   : > { %439 = vst.msk [vmem:[#allocation2 + $0x70] sm:$0x1] %vm431_vm2, %v1076_v6  ;;  %440 = vst.msk [vmem:[#allocation2 + $0x80] sm:$0x1] %vm431_vm2, %v1076_v6  ;;  %s1397_s10 = smov (!%p330_p3, %s1006_s10), 1  ;;  %v367_v18 = vsub.s32 %v364_v16, %v1173_v17  ;;  %v1200_v38 = vrot.slane %v1197_v29, %v392_v24  ;;  %v1203_v39 = vrot.slane %v1197_v29, %v493_v25  ;;  %v521_v40 = vsub.s32 2, %v1173_v17 }
   0xe   : > { %445 = vst.msk [vmem:[#allocation2 + $0x39] sm:$0x1] %vm431_vm2, %v1076_v6  ;;  %446 = vst.msk [vmem:[#allocation2 + $0x49] sm:$0x1] %vm431_vm2, %v1076_v6  ;;  %v355_v9 = vrot.slane %v353_v8, 7  ;;  %s1029_s17 = sshll.u32 %s1397_s10, 6 }
   0xf   : > { %447 = vst.msk [vmem:[#allocation2 + $0x59] sm:$0x1] %vm431_vm2, %v1076_v6  ;;  %448 = vst.msk [vmem:[#allocation2 + $0x69] sm:$0x1] %vm431_vm2, %v1076_v6  ;;  %s334_s20 = scalar_lea.vmem %s1386_s0, %s1029_s17  ;;  %v483_v46 = vld [vmem:[#allocation2 + $0x1] sm:$0xff]  ;;  %v1209_v56 = vrot.slane %v1197_v29, %v521_v40  ;;  %v605_v14 = vsub.s32 5, %v1173_v17  ;;  %s1343_s16 = scalar_lea.vmem %s1394_s8, %s1029_s17 }
  0x10   : > { %449 = vst.msk [vmem:[#allocation2 + $0x79] sm:$0x1] %vm431_vm2, %v1076_v6  ;;  %450 = vst.msk [vmem:[#allocation2 + $0x89] sm:$0x1] %vm431_vm2, %v1076_v6  ;;  %v357_v10 = vsub.f32 %v352_v7, %v355_v9  ;;  %v381_v28 = vld [vmem:[%s334_s20] sm:$0xff]  ;;  %v382_v30 = vld [vmem:[%s334_s20 + $0x8] sm:$0xff]  ;;  %v495_v55 = vmul.f32 %v1203_v39, %v483_v46 }
  0x11   : > { %432 = vst.msk [vmem:[#allocation2] sm:$0x1] %vm431_vm2, %v1076_v6  ;;  %442 = vst.msk [vmem:[#allocation2 + $0x9] sm:$0x1] %vm431_vm2, %v1076_v6  ;;  %v383_v31 = vld [vmem:[%s334_s20 + $0x10] sm:$0xff]  ;;  %v384_v32 = vld [vmem:[%s334_s20 + $0x18] sm:$0xff] }
  0x12   : > { %441 = vst.msk [vmem:[#allocation2 + $0x90] sm:$0x1] %vm431_vm2, %v1076_v6  ;;  %451 = vst.msk [vmem:[#allocation2 + $0x99] sm:$0x1] %vm431_vm2, %v1076_v6  ;;  %v358_v11 = vmax.f32 %v357_v10, 0.0  ;;  %v385_v35 = vld [vmem:[%s334_s20 + $0x20] sm:$0xff] }
  0x13   : > { %v386_v36 = vld [vmem:[%s334_s20 + $0x28] sm:$0xff]  ;;  %v387_v37 = vld [vmem:[%s334_s20 + $0x30] sm:$0xff]  ;;  %v388_v41 = vld [vmem:[%s334_s20 + $0x38] sm:$0xff]  ;;  %v549_v10 = vsub.s32 3, %v1173_v17  ;;  %v634_v15 = vsub.s32 6, %v1173_v17  ;;  %v662_v16 = vsub.s32 7, %v1173_v17 }
  0x14   : > { %v359_v12 = vadd.f32 1e-05, %v358_v11  ;;  %v577_v11 = vsub.s32 4, %v1173_v17  ;;  %s1015_s17 = sshll.u32 %s1397_s10, 1 }
  0x15   : > { %v1235_v25 = vrot.slane %v1197_v29, %v634_v15  ;;  %s343_s20 = scalar_lea.vmem %s1395_s9, %s1015_s17 }
  0x16   : > { %1066 = vrsqrt.f32 %v359_v12 }
  0x18   : > { %v463_v45 = vld [vmem:[#allocation2] sm:$0xff] }
  0x19   : > { %v475_v54 = vmul.f32 %v1200_v38, %v463_v45  ;;  %v511_v5 = vld [vmem:[#allocation2 + $0x2] sm:$0xff] }
  0x1a   : > { %v523_v13 = vmul.f32 %v1209_v56, %v511_v5 }
  0x1b   : > { %v503_v12 = vadd.f32 %v495_v55, %v475_v54 }
  0x20   : > { %v1067_v19 = vpop.eup %1066 }
  0x21   : > { %v368_v20 = vrot.slane %v1067_v19, %v367_v18  ;;  %v1229_v19 = vrot.slane %v1197_v29, %v577_v11 }
  0x23   : > { %v369_v21 = vcombine.high %v368_v20, %v368_v20  ;;  %v531_v20 = vadd.f32 %v523_v13, %v503_v12 }
  0x25   : > { %v376_v23 = vrot.slane %v369_v21, %v367_v18  ;;  %v1226_v18 = vrot.slane %v1197_v29, %v549_v10  ;;  %v1232_v21 = vrot.slane %v1197_v29, %v605_v14  ;;  %v1274_v14 = vld [vmem:[%s1391_s5] ss:$0 sm:$0xff] }
  0x27   : > { %v378_v27 = vmul.f32 %v376_v23, %v346_v22 }
  0x29   : > { %v379_v33 = vmul.f32 %v378_v27, %v352_v7  ;;  %v393_v34 = vrot.slane %v378_v27, %v392_v24 }
  0x2b   : > { %v380_v42 = vsub.f32 %v347_v26, %v379_v33  ;;  %v395_v43 = vmul.f32 %v393_v34, %v381_v28  ;;  %v396_v44 = vmul.f32 %v393_v34, %v382_v30  ;;  %v397_v47 = vmul.f32 %v393_v34, %v383_v31  ;;  %v1246_v31 = vld [vmem:[%s1390_s4 + $0x8] ss:$0 sm:$0xff] }
  0x2c   : > { %v398_v48 = vmul.f32 %v393_v34, %v384_v32  ;;  %v399_v49 = vmul.f32 %v393_v34, %v385_v35  ;;  %v400_v50 = vmul.f32 %v393_v34, %v386_v36  ;;  %v401_v51 = vmul.f32 %v393_v34, %v387_v37 }
  0x2d   : > { %v407_v52 = vrot.slane %v380_v42, %v392_v24  ;;  %v402_v53 = vmul.f32 %v393_v34, %v388_v41  ;;  %v1238_v26 = vrot.slane %v1197_v29, %v662_v16 }
  0x2f   : > { %v409_v57 = vadd.f32 %v407_v52, %v395_v43  ;;  %v410_v58 = vadd.f32 %v407_v52, %v396_v44  ;;  %v411_v59 = vadd.f32 %v407_v52, %v397_v47  ;;  %v412_v60 = vadd.f32 %v407_v52, %v398_v48 }
  0x30   : > { %v413_v61 = vadd.f32 %v407_v52, %v399_v49  ;;  %v414_v62 = vadd.f32 %v407_v52, %v400_v50  ;;  %v415_v63 = vadd.f32 %v407_v52, %v401_v51  ;;  %v416_v0 = vadd.f32 %v407_v52, %v402_v53 }
  0x31   : > { %v417_v1 = vmax.f32 %v409_v57, 0.0  ;;  %v418_v2 = vmax.f32 %v410_v58, 0.0  ;;  %v419_v3 = vmax.f32 %v411_v59, 0.0  ;;  %v420_v4 = vmax.f32 %v412_v60, 0.0 }
  0x32   : > { %v421_v6 = vmax.f32 %v413_v61, 0.0  ;;  %v422_v7 = vmax.f32 %v414_v62, 0.0  ;;  %v423_v8 = vmax.f32 %v415_v63, 0.0  ;;  %v424_v9 = vmax.f32 %v416_v0, 0.0 }
  0x33   : > { %453 = vst.msk [vmem:[#allocation2 + $0x11] sm:$0xff] %vm425_vm1, %v417_v1  ;;  %454 = vst.msk [vmem:[#allocation2 + $0x21] sm:$0xff] %vm425_vm1, %v418_v2 }
  0x34   : > { %455 = vst.msk [vmem:[#allocation2 + $0x31] sm:$0xff] %vm425_vm1, %v419_v3  ;;  %456 = vst.msk [vmem:[#allocation2 + $0x41] sm:$0xff] %vm425_vm1, %v420_v4 }
  0x35   : > { %457 = vst.msk [vmem:[#allocation2 + $0x51] sm:$0xff] %vm425_vm1, %v421_v6  ;;  %458 = vst.msk [vmem:[#allocation2 + $0x61] sm:$0xff] %vm425_vm1, %v422_v7 }
  0x36   : > { %459 = vst.msk [vmem:[#allocation2 + $0x71] sm:$0xff] %vm425_vm1, %v423_v8  ;;  %460 = vst.msk [vmem:[#allocation2 + $0x81] sm:$0xff] %vm425_vm1, %v424_v9 }
  0x3a   : > { %v539_v22 = vld [vmem:[#allocation2 + $0x10] sm:$0xff]  ;;  %v624_v28 = vld [vmem:[#allocation2 + $0x20] sm:$0xff] }
  0x3b   : > { %v567_v23 = vld [vmem:[#allocation2 + $0x11] sm:$0xff]  ;;  %v551_v17 = vmul.f32 %v1226_v18, %v539_v22  ;;  %v476_v30 = vmul.f32 %v539_v22, %v1200_v38  ;;  %v652_v32 = vld [vmem:[#allocation2 + $0x21] sm:$0xff]  ;;  %v636_v37 = vmul.f32 %v1235_v25, %v624_v28  ;;  %v552_v42 = vmul.f32 %v624_v28, %v1226_v18 }
  0x3c   : > { %v595_v24 = vld [vmem:[#allocation2 + $0x12] sm:$0xff]  ;;  %v579_v27 = vmul.f32 %v1229_v19, %v567_v23  ;;  %v496_v33 = vmul.f32 %v567_v23, %v1203_v39  ;;  %v680_v29 = vld [vmem:[#allocation2 + $0x22] sm:$0xff]  ;;  %v664_v40 = vmul.f32 %v1238_v26, %v652_v32  ;;  %v477_v46 = vmul.f32 %v624_v28, %v1200_v38 }
  0x3d   : > { %v559_v34 = vadd.f32 %v551_v17, %v531_v20  ;;  %v607_v35 = vmul.f32 %v1232_v21, %v595_v24  ;;  %v524_v36 = vmul.f32 %v595_v24, %v1209_v56  ;;  %v692_v44 = vmul.f32 %v1246_v31, %v680_v29  ;;  %v625_v45 = vld [vmem:[#allocation2 + $0x30] sm:$0xff]  ;;  %v626_v1 = vld [vmem:[#allocation2 + $0x40] sm:$0xff] }
  0x3e   : > { %v504_v41 = vadd.f32 %v496_v33, %v476_v30  ;;  %v497_v47 = vmul.f32 %v652_v32, %v1203_v39  ;;  %v580_v49 = vmul.f32 %v652_v32, %v1229_v19  ;;  %v608_v50 = vmul.f32 %v680_v29, %v1232_v21  ;;  %v653_v51 = vld [vmem:[#allocation2 + $0x31] sm:$0xff]  ;;  %v654_v8 = vld [vmem:[#allocation2 + $0x41] sm:$0xff] }
  0x3f   : > { %v587_v43 = vadd.f32 %v579_v27, %v559_v34  ;;  %v681_v52 = vld [vmem:[#allocation2 + $0x32] sm:$0xff]  ;;  %v525_v53 = vmul.f32 %v680_v29, %v1209_v56  ;;  %v637_v55 = vmul.f32 %v1235_v25, %v625_v45  ;;  %v553_v58 = vmul.f32 %v625_v45, %v1226_v18  ;;  %v682_v11 = vld [vmem:[#allocation2 + $0x42] sm:$0xff] }
  0x40   : > { %v532_v48 = vadd.f32 %v524_v36, %v504_v41  ;;  %v505_v57 = vadd.f32 %v497_v47, %v477_v46  ;;  %v665_v60 = vmul.f32 %v1238_v26, %v653_v51  ;;  %v581_v61 = vmul.f32 %v653_v51, %v1229_v19  ;;  %v627_v27 = vld [vmem:[#allocation2 + $0x50] sm:$0xff] }
  0x41   : > { %v615_v54 = vadd.f32 %v607_v35, %v587_v43  ;;  %v478_v62 = vmul.f32 %v625_v45, %v1200_v38  ;;  %v498_v2 = vmul.f32 %v653_v51, %v1203_v39  ;;  %v526_v3 = vmul.f32 %v681_v52, %v1209_v56 }
  0x42   : > { %v560_v59 = vadd.f32 %v552_v42, %v532_v48  ;;  %v533_v0 = vadd.f32 %v525_v53, %v505_v57  ;;  %v693_v5 = vmul.f32 %v1246_v31, %v681_v52  ;;  %v609_v6 = vmul.f32 %v681_v52, %v1232_v21 }
  0x43   : > { %v644_v63 = vadd.f32 %v636_v37, %v615_v54  ;;  %v638_v7 = vmul.f32 %v1235_v25, %v626_v1  ;;  %v506_v12 = vadd.f32 %v498_v2, %v478_v62  ;;  %v554_v13 = vmul.f32 %v626_v1, %v1226_v18  ;;  %v655_v37 = vld [vmem:[#allocation2 + $0x51] sm:$0xff]  ;;  %v656_v62 = vld [vmem:[#allocation2 + $0x61] sm:$0xff] }
  0x44   : > { %v588_v4 = vadd.f32 %v580_v49, %v560_v59  ;;  %v561_v10 = vadd.f32 %v553_v58, %v533_v0  ;;  %v666_v16 = vmul.f32 %v1238_v26, %v654_v8  ;;  %v582_v20 = vmul.f32 %v654_v8, %v1229_v19 }
  0x45   : > { %v672_v9 = vadd.f32 %v664_v40, %v644_v63  ;;  %v479_v22 = vmul.f32 %v626_v1, %v1200_v38  ;;  %v534_v17 = vadd.f32 %v526_v3, %v506_v12  ;;  %v499_v28 = vmul.f32 %v654_v8, %v1203_v39  ;;  %v683_v40 = vld [vmem:[#allocation2 + $0x52] sm:$0xff] }
  0x46   : > { %v616_v15 = vadd.f32 %v608_v50, %v588_v4  ;;  %v589_v24 = vadd.f32 %v581_v61, %v561_v10  ;;  %v610_v32 = vmul.f32 %v682_v11, %v1232_v21  ;;  %v527_v33 = vmul.f32 %v682_v11, %v1209_v56  ;;  %v628_v50 = vld [vmem:[#allocation2 + $0x60] sm:$0xff] }
  0x47   : > { %v700_v23 = vadd.f32 %v692_v44, %v672_v9  ;;  %v555_v34 = vmul.f32 %v627_v27, %v1226_v18  ;;  %v562_v36 = vadd.f32 %v554_v13, %v534_v17  ;;  %v507_v41 = vadd.f32 %v499_v28, %v479_v22  ;;  %v629_v22 = vld [vmem:[#allocation2 + $0x70] sm:$0xff] }
  0x48   : > { %v645_v30 = vadd.f32 %v637_v55, %v616_v15  ;;  %v617_v29 = vadd.f32 %v609_v6, %v589_v24  ;;  %v694_v43 = vmul.f32 %v1246_v31, %v682_v11  ;;  %v639_v44 = vmul.f32 %v1235_v25, %v627_v27  ;;  %v685_v28 = vld [vmem:[#allocation2 + $0x72] sm:$0xff] }
  0x49   : > { %v715_v35 = vadd.f32 %v1274_v14, %v700_v23  ;;  %v667_v45 = vmul.f32 %v1238_v26, %v655_v37  ;;  %v590_v47 = vadd.f32 %v582_v20, %v562_v36  ;;  %v535_v48 = vadd.f32 %v527_v33, %v507_v41 }
  0x4a   : > { %v673_v42 = vadd.f32 %v665_v60, %v645_v30  ;;  %v646_v46 = vadd.f32 %v638_v7, %v617_v29  ;;  %v583_v49 = vmul.f32 %v655_v37, %v1229_v19  ;;  %v480_v52 = vmul.f32 %v627_v27, %v1200_v38  ;;  %v657_v27 = vld [vmem:[#allocation2 + $0x71] sm:$0xff] }
  0x4b   : > { %1042 = vmatprep.mubr.msk.f32.mxu0 %vm425_vm1, %v715_v35  ;;  %v500_v53 = vmul.f32 %v655_v37, %v1203_v39  ;;  %v528_v54 = vmul.f32 %v683_v40, %v1209_v56  ;;  %v618_v57 = vadd.f32 %v610_v32, %v590_v47  ;;  %v563_v58 = vadd.f32 %v555_v34, %v535_v48 }
  0x4c   : > { %v701_v51 = vadd.f32 %v693_v5, %v673_v42  ;;  %v674_v55 = vadd.f32 %v666_v16, %v646_v46  ;;  %v611_v59 = vmul.f32 %v683_v40, %v1232_v21  ;;  %v695_v61 = vmul.f32 %v1246_v31, %v683_v40  ;;  %v684_v5 = vld [vmem:[#allocation2 + $0x62] sm:$0xff] }
  0x4d   : > { %v508_v63 = vadd.f32 %v500_v53, %v480_v52  ;;  %v556_v0 = vmul.f32 %v628_v50, %v1226_v18  ;;  %v647_v2 = vadd.f32 %v639_v44, %v618_v57  ;;  %v591_v3 = vadd.f32 %v583_v49, %v563_v58  ;;  %v630_v40 = vld [vmem:[#allocation2 + $0x80] sm:$0xff] }
  0x4e   : > { %v716_v60 = vadd.f32 %v1274_v14, %v701_v51  ;;  %v702_v1 = vadd.f32 %v694_v43, %v674_v55  ;;  %v640_v4 = vmul.f32 %v1235_v25, %v628_v50  ;;  %v668_v6 = vmul.f32 %v1238_v26, %v656_v62  ;;  %v658_v49 = vld [vmem:[#allocation2 + $0x81] sm:$0xff] }
  0x4f   : > { %v536_v7 = vadd.f32 %v528_v54, %v508_v63  ;;  %v584_v8 = vmul.f32 %v656_v62, %v1229_v19  ;;  %v481_v9 = vmul.f32 %v628_v50, %v1200_v38  ;;  %v675_v11 = vadd.f32 %v667_v45, %v647_v2  ;;  %v686_v55 = vld [vmem:[#allocation2 + $0x82] sm:$0xff]  ;;  %v659_v2 = vld [vmem:[#allocation2 + $0x91] sm:$0xff] }
  0x50   : > { %1043 = vmatmul.mubr.msk.f32.vlgmr.msra.gmra.mrb[0].mxu0 %vm425_vm1, %v716_v60  ;;  %v717_v10 = vadd.f32 %v1274_v14, %v702_v1  ;;  %v619_v12 = vadd.f32 %v611_v59, %v591_v3  ;;  %v501_v13 = vmul.f32 %v656_v62, %v1203_v39  ;;  %v696_v15 = vmul.f32 %v1246_v31, %v684_v5 }
  0x51   : > { %v564_v16 = vadd.f32 %v556_v0, %v536_v7  ;;  %v612_v20 = vmul.f32 %v684_v5, %v1232_v21  ;;  %v529_v23 = vmul.f32 %v684_v5, %v1209_v56  ;;  %v703_v24 = vadd.f32 %v695_v61, %v675_v11  ;;  %v631_v61 = vld [vmem:[#allocation2 + $0x90] sm:$0xff] }
  0x52   : > { %1045 = vmatprep.mubr.msk.f32.mxu0 %vm425_vm1, %v717_v10  ;;  %v648_v17 = vadd.f32 %v640_v4, %v619_v12  ;;  %v509_v30 = vadd.f32 %v501_v13, %v481_v9  ;;  %v557_v32 = vmul.f32 %v629_v22, %v1226_v18  ;;  %v641_v34 = vmul.f32 %v1235_v25, %v629_v22 }
  0x53   : > { %v592_v33 = vadd.f32 %v584_v8, %v564_v16  ;;  %v585_v35 = vmul.f32 %v657_v27, %v1229_v19  ;;  %v718_v29 = vadd.f32 %v1274_v14, %v703_v24  ;;  %v482_v41 = vmul.f32 %v629_v22, %v1200_v38 }
  0x54   : > { %v676_v36 = vadd.f32 %v668_v6, %v648_v17  ;;  %v537_v37 = vadd.f32 %v529_v23, %v509_v30  ;;  %v669_v43 = vmul.f32 %v1238_v26, %v657_v27  ;;  %v502_v44 = vmul.f32 %v657_v27, %v1203_v39  ;;  %v687_v6 = vld [vmem:[#allocation2 + $0x92] sm:$0xff] }
  0x55   : > { %v620_v42 = vadd.f32 %v612_v20, %v592_v33  ;;  %v530_v45 = vmul.f32 %v685_v28, %v1209_v56  ;;  %1046 = vmatmul.mubr.msk.f32.gmra.mrb[2].mxu0 %vm425_vm1, %v718_v29  ;;  %v613_v48 = vmul.f32 %v685_v28, %v1232_v21  ;;  %v697_v51 = vmul.f32 %v1246_v31, %v685_v28 }
  0x56   : > { %v704_v46 = vadd.f32 %v696_v15, %v676_v36  ;;  %v565_v47 = vadd.f32 %v557_v32, %v537_v37  ;;  %v510_v52 = vadd.f32 %v502_v44, %v482_v41  ;;  %v558_v38 = vmul.f32 %v630_v40, %v1226_v18  ;;  %v1018_v15 = vld [vmem:[%s1393_s7] ss:$0 sm:$0xff] }
  0x57   : > { %v649_v50 = vadd.f32 %v641_v34, %v620_v42  ;;  %v642_v39 = vmul.f32 %v1235_v25, %v630_v40  ;;  %v586_v58 = vmul.f32 %v658_v49, %v1229_v19  ;;  %v670_v60 = vmul.f32 %v1238_v26, %v658_v49 }
  0x58   : > { %v719_v53 = vadd.f32 %v1274_v14, %v704_v46  ;;  %v593_v54 = vadd.f32 %v585_v35, %v565_v47  ;;  %v538_v57 = vadd.f32 %v530_v45, %v510_v52  ;;  %v614_v18 = vmul.f32 %v686_v55, %v1232_v21 }
  0x59   : > { %v677_v56 = vadd.f32 %v669_v43, %v649_v50  ;;  %v698_v1 = vmul.f32 %v1246_v31, %v686_v55  ;;  %v643_v5 = vmul.f32 %v1235_v25, %v631_v61  ;;  %v671_v8 = vmul.f32 %v1238_v26, %v659_v2 }
  0x5a   : > { %1048 = vmatprep.mubr.msk.f32.mxu1 %vm425_vm1, %v719_v53  ;;  %v621_v59 = vadd.f32 %v613_v48, %v593_v54  ;;  %v566_v63 = vadd.f32 %v558_v38, %v538_v57  ;;  %v699_v21 = vmul.f32 %v1246_v31, %v687_v6 }
  0x5b   : > { %v705_v62 = vadd.f32 %v697_v51, %v677_v56 }
  0x5c   : > { %v650_v0 = vadd.f32 %v642_v39, %v621_v59  ;;  %v594_v4 = vadd.f32 %v586_v58, %v566_v63 }
  0x5d   : > { %v720_v3 = vadd.f32 %v1274_v14, %v705_v62 }
  0x5e   : > { %v678_v19 = vadd.f32 %v670_v60, %v650_v0  ;;  %v622_v7 = vadd.f32 %v614_v18, %v594_v4 }
  0x5f   : > { %1049 = vmatmul.mubr.msk.f32.vlgmr.msra.gmra.mrb[0].mxu1 %vm425_vm1, %v720_v3 }
  0x60   : > { %v706_v9 = vadd.f32 %v698_v1, %v678_v19  ;;  %v651_v10 = vadd.f32 %v643_v5, %v622_v7 }
  0x62   : > { %v721_v11 = vadd.f32 %v1274_v14, %v706_v9  ;;  %v679_v12 = vadd.f32 %v671_v8, %v651_v10 }
  0x64   : > { %1051 = vmatprep.mubr.msk.f32.mxu1 %vm425_vm1, %v721_v11  ;;  %v707_v13 = vadd.f32 %v699_v21, %v679_v12 }
  0x66   : > { %v722_v25 = vadd.f32 %v1274_v14, %v707_v13 }
  0x68   : > { %1052 = vmatmul.mubr.msk.f32.gmra.mrb[2].mxu1 %vm425_vm1, %v722_v25 }
 0x123   : > { %v1044_v26 = vpop.f32.mrb[0].mxu0 }
 0x124   : > { %v827_v31 = vadd.f32 %v1044_v26, %v1018_v15  ;;  %v821_v16 = vpop.f32.mrb[1].mxu0 }
 0x125   : > { %v822_v20 = vadd.f32 %v1018_v15, %v821_v16 }
 0x126   : > { %v861_v14 = vsel %vm425_vm1, %v827_v31, 0.0  ;;  %v883_v22 = vmul.f32 %v827_v31, %v827_v31  ;;  %913 = vst.msk [vmem:[%s1343_s16 + $0x8] sm:$0xff] %vm425_vm1, %v827_v31 }
 0x127   : > { %v860_v23 = vsel %vm425_vm1, %v822_v20, 0.0  ;;  %v882_v24 = vmul.f32 %v822_v20, %v822_v20  ;;  %912 = vst.msk [vmem:[%s1343_s16] sm:$0xff] %vm425_vm1, %v822_v20 }
 0x128   : > { %v891_v17 = vsel %vm425_vm1, %v883_v22, 0.0  ;;  %v862_v27 = vadd.f32 %v861_v14, %v860_v23  ;;  %v1047_v32 = vpop.f32.mrb[2].mxu0 }
 0x129   : > { %v890_v28 = vsel %vm425_vm1, %v882_v24, 0.0  ;;  %v837_v33 = vadd.f32 %v1047_v32, %v1018_v15  ;;  %v831_v34 = vpop.f32.mrb[3].mxu0 }
 0x12a   : > { %v892_v30 = vadd.f32 %v891_v17, %v890_v28  ;;  %v832_v35 = vadd.f32 %v1018_v15, %v831_v34 }
 0x12b   : > { %915 = vst.msk [vmem:[%s1343_s16 + $0x18] sm:$0xff] %vm425_vm1, %v837_v33  ;;  %v885_v29 = vmul.f32 %v837_v33, %v837_v33  ;;  %v865_v41 = vsel %vm425_vm1, %v837_v33, 0.0 }
 0x12c   : > { %v863_v36 = vsel %vm425_vm1, %v832_v35, 0.0  ;;  %v884_v37 = vmul.f32 %v832_v35, %v832_v35  ;;  %914 = vst.msk [vmem:[%s1343_s16 + $0x10] sm:$0xff] %vm425_vm1, %v832_v35 }
 0x12d   : > { %v864_v40 = vadd.f32 %v863_v36, %v862_v27  ;;  %v895_v45 = vsel %vm425_vm1, %v885_v29, 0.0 }
 0x12e   : > { %v893_v42 = vsel %vm425_vm1, %v884_v37, 0.0 }
 0x12f   : > { %v894_v43 = vadd.f32 %v893_v42, %v892_v30  ;;  %v866_v44 = vadd.f32 %v865_v41, %v864_v40 }
 0x131   : > { %v896_v47 = vadd.f32 %v895_v45, %v894_v43 }
 0x132   : > { %v1050_v46 = vpop.f32.mrb[0].mxu1 }
 0x133   : > { %v847_v48 = vadd.f32 %v1050_v46, %v1018_v15  ;;  %v841_v49 = vpop.f32.mrb[1].mxu1 }
 0x134   : > { %v842_v50 = vadd.f32 %v1018_v15, %v841_v49 }
 0x135   : > { %917 = vst.msk [vmem:[%s1343_s16 + $0x28] sm:$0xff] %vm425_vm1, %v847_v48  ;;  %v887_v51 = vmul.f32 %v847_v48, %v847_v48  ;;  %v869_v54 = vsel %vm425_vm1, %v847_v48, 0.0 }
 0x136   : > { %v867_v52 = vsel %vm425_vm1, %v842_v50, 0.0  ;;  %v886_v38 = vmul.f32 %v842_v50, %v842_v50  ;;  %916 = vst.msk [vmem:[%s1343_s16 + $0x20] sm:$0xff] %vm425_vm1, %v842_v50 }
 0x137   : > { %v868_v53 = vadd.f32 %v867_v52, %v866_v44  ;;  %v899_v57 = vsel %vm425_vm1, %v887_v51, 0.0 }
 0x138   : > { %v897_v39 = vsel %vm425_vm1, %v886_v38, 0.0 }
 0x139   : > { %v898_v55 = vadd.f32 %v897_v39, %v896_v47  ;;  %v870_v56 = vadd.f32 %v869_v54, %v868_v53 }
 0x13b   : > { %v900_v58 = vadd.f32 %v899_v57, %v898_v55  ;;  %v1053_v59 = vpop.f32.mrb[2].mxu1 }
 0x13c   : > { %v857_v60 = vadd.f32 %v1053_v59, %v1018_v15  ;;  %v851_v61 = vpop.f32.mrb[3].mxu1 }
 0x13d   : > { %v852_v62 = vadd.f32 %v1018_v15, %v851_v61 }
 0x13e   : > { %919 = vst.msk [vmem:[%s1343_s16 + $0x38] sm:$0xff] %vm425_vm1, %v857_v60  ;;  %v889_v63 = vmul.f32 %v857_v60, %v857_v60  ;;  %v873_v2 = vsel %vm425_vm1, %v857_v60, 0.0 }
 0x13f   : > { %v871_v18 = vsel %vm425_vm1, %v852_v62, 0.0  ;;  %v888_v0 = vmul.f32 %v852_v62, %v852_v62  ;;  %918 = vst.msk [vmem:[%s1343_s16 + $0x30] sm:$0xff] %vm425_vm1, %v852_v62 }
 0x140   : > { %v872_v1 = vadd.f32 %v871_v18, %v870_v56  ;;  %v903_v19 = vsel %vm425_vm1, %v889_v63, 0.0 }
 0x141   : > { %v901_v3 = vsel %vm425_vm1, %v888_v0, 0.0 }
 0x142   : > { %v874_v4 = vadd.f32 %v873_v2, %v872_v1  ;;  %v902_v5 = vadd.f32 %v901_v3, %v900_v58 }
 0x144   : > { %v875_v6 = vrot.slane %v874_v4, 4  ;;  %v904_v7 = vadd.f32 %v903_v19, %v902_v5 }
 0x146   : > { %v876_v8 = vadd.f32 %v875_v6, %v874_v4  ;;  %v905_v9 = vrot.slane %v904_v7, 4 }
 0x148   : > { %v877_v10 = vrot.slane %v876_v8, 2  ;;  %v906_v21 = vadd.f32 %v905_v9, %v904_v7 }
 0x14a   : > { %v878_v11 = vadd.f32 %v877_v10, %v876_v8  ;;  %v907_v12 = vrot.slane %v906_v21, 2 }
 0x14c   : > { %v879_v13 = vrot.slane %v878_v11, 1  ;;  %v908_v25 = vadd.f32 %v907_v12, %v906_v21 }
 0x14e   : > { %v880_v15 = vadd.f32 %v879_v13, %v878_v11  ;;  %v909_v26 = vrot.slane %v908_v25, 1 }
 0x150   : > { %881 = vst.msk [vmem:[%s343_s20] sm:$0x1] %vm431_vm2, %v880_v15  ;;  %v910_v31 = vadd.f32 %v909_v26, %v908_v25 }
 0x152   : > { %911 = vst.msk [vmem:[%s343_s20 + $0x1] sm:$0x1] %vm431_vm2, %v910_v31 }
 0x153 PF: > { %s20_s30 = sadd.s32 1, %s1074_s30  }
 0x154   : > { %p17_p4 = scmp.ge.s32.totalorder %s20_s30, 4  }
 0x156   :  { %19 = sbr.rel (!%p17_p4) target bundleno = 1 (0x1), region = 97 }

// kernel: _lambda_.6
= control target key start
LH: loop header
LB: loop body
LE: loop exit
PB: predicated region body
PF: predicated region fallthrough
CT: control target
= control target key end

     0   :  { %s1309_s30 = smov 0   ;;  %s1622_s0 = inlined_call_operand.vmem [shape: f32[2,9,9,4], index: 0, kind: input, shape index: {}]   ;;  %s1623_s1 = inlined_call_operand.vmem [shape: f32[2,9,9,4], index: 1, kind: input, shape index: {}]   ;;  %s1624_s2 = inlined_call_operand.vmem [shape: f32[2,9,9,4], index: 2, kind: input, shape index: {}]   ;;  %s1625_s3 = inlined_call_operand.vmem [shape: f32[2,9,9,4], index: 3, kind: input, shape index: {}]   ;;  %s1626_s4 = inlined_call_operand.vmem [shape: f32[9,4], index: 4, kind: input, shape index: {}]   ;;  %s1627_s5 = inlined_call_operand.vmem [shape: f32[1,4], index: 5, kind: input, shape index: {}]   ;;  %s1628_s6 = inlined_call_operand.vmem [shape: f32[4,8], index: 6, kind: input, shape index: {}]   ;;  %s1629_s7 = inlined_call_operand.vmem [shape: f32[1,8], index: 7, kind: input, shape index: {}]   ;;  %s1630_s8 = inlined_call_operand.vmem [shape: f32[2,8,8,8], index: 8, kind: output, shape index: {0}]   ;;  %s1631_s9 = inlined_call_operand.vmem [shape: f32[2,2,8], index: 9, kind: output, shape index: {1}]  }
   0x1 LB: > { %s1190_s10 = sadd.s32 4294967295, %s1257_s30   ;;  %p1194_p0 = scmp.ge.s32.totalorder %s1257_s30, 1  ;;  %s1257_s30 = sphi %s1309_s30, %s20_s30  }
   0x2   : > { %p320_p1 = scmp.lt.s32.totalorder %s1257_s30, 3 }
   0x4   : > { %p321_p2 = pnand %p1194_p0, %p320_p1 }
   0x5   : > { %v864_v0 = vld [vmem:[%s1628_s6] sm:$0xf] (!%p321_p2)  ;;  %vm897_vm0 = vcmask (!%p321_p2), 1043456   ;;  %p375_p3 = scmp.lt.s32.totalorder (!%p321_p2), %s1190_s10, 1  ;;  %v508_v1 = vlaneseq (!%p321_p2)  ;;  %vm576_vm1 = vcmask (!%p321_p2), 1046528   ;;  %vm872_vm2 = vcmask (!%p321_p2), 31744  }
   0x6   : > { %324 = sbr.rel (%p321_p2) target bundleno = 338 (0x152), region = 52  ;;  %1226 = vmatprep.subr.msk.mxu0 (!%p321_p2), %vm897_vm0, %v864_v0  ;;  %1240 = vmatprep.subr.msk.mxu1 (!%p321_p2), %vm897_vm0, %v864_v0  ;;  %v506_v3 = vld [vmem:[%s1626_s4] sm:$0xff] (!%p321_p2)  ;;  %v1382_v45 = vld [vmem:[%s1626_s4 + $0x8] ss:$0 sm:$0xff] (!%p321_p2)  ;;  %vm1006_vm3 = vcmask (!%p321_p2), 64512   ;;  %vm1028_vm4 = vcmask (!%p321_p2), 57344  }
   0x7   : > { %1227 = vmatpush3.msk.msra.mxu0 (!%p321_p2), %vm897_vm0, %v864_v0  ;;  %v509_v2 = vshrl.u32 (!%p321_p2), %v508_v1, 7  ;;  %1241 = vmatpush3.msk.msra.mxu1 (!%p321_p2), %vm897_vm0, %v864_v0 }
   0x9   : > { %v510_v4 = vsub.s32 (!%p321_p2), 0, %v509_v2  ;;  %v522_v5 = vsub.s32 (!%p321_p2), 1, %v509_v2  ;;  %v542_v6 = vsub.s32 (!%p321_p2), 2, %v509_v2  ;;  %v619_v7 = vsub.s32 (!%p321_p2), 3, %v509_v2 }
   0xa   : > { %v639_v8 = vsub.s32 (!%p321_p2), 4, %v509_v2  ;;  %v659_v9 = vsub.s32 (!%p321_p2), 5, %v509_v2  ;;  %v735_v16 = vsub.s32 (!%p321_p2), 6, %v509_v2  ;;  %v755_v17 = vsub.s32 (!%p321_p2), 7, %v509_v2 }
   0xb   : > { %v1336_v10 = vrot.slane (!%p321_p2), %v506_v3, %v510_v4  ;;  %v1351_v14 = vrot.slane (!%p321_p2), %v506_v3, %v522_v5  ;;  %v1353_v15 = vrot.slane (!%p321_p2), %v506_v3, %v542_v6  ;;  %v1359_v23 = vrot.slane (!%p321_p2), %v506_v3, %v619_v7 }
   0xc   : > { %v1364_v29 = vrot.slane (!%p321_p2), %v506_v3, %v639_v8  ;;  %v1366_v30 = vrot.slane (!%p321_p2), %v506_v3, %v659_v9  ;;  %v1385_v48 = vrot.slane (!%p321_p2), %v506_v3, %v735_v16  ;;  %v1387_v49 = vrot.slane (!%p321_p2), %v506_v3, %v755_v17 }
   0xd   : > { %s1633_s10 = smov (!%p375_p3, %s1190_s10), 1 }
   0xe   : > { %s1242_s15 = smul.u32 144, %s1633_s10  ;;  %s1216_s13 = sshll.u32 %s1633_s10, 6 }
   0xf   : > { %s1201_s19 = sshll.u32 %s1633_s10, 1 }
  0x10   : > { %s1329_s18 = scalar_lea.vmem %s1622_s0, %s1242_s15  ;;  %s1334_s21 = scalar_lea.vmem %s1623_s1, %s1242_s15 }
  0x11   : > { %s1341_s24 = scalar_lea.vmem %s1624_s2, %s1242_s15  ;;  %s1346_s27 = scalar_lea.vmem %s1625_s3, %s1242_s15  ;;  %v404_v11 = vld [vmem:[%s1329_s18] sm:$0xff]  ;;  %v405_v12 = vld [vmem:[%s1329_s18 + $0x8] sm:$0x1]  ;;  %v406_v13 = vld [vmem:[%s1329_s18 + $0x10] sm:$0xff] }
  0x12   : > { %v407_v18 = vld [vmem:[%s1329_s18 + $0x18] sm:$0x1]  ;;  %v422_v19 = vmax.f32 %v404_v11, 0.0  ;;  %v423_v20 = vmax.f32 %v405_v12, 0.0  ;;  %v1356_v21 = vmax.f32 %v406_v13, 0.0  ;;  %v440_v22 = vld [vmem:[%s1334_s21] sm:$0xff]  ;;  %s403_s22 = scalar_lea.vmem %s1631_s9, %s1201_s19 }
  0x13   : > { %v425_v24 = vmax.f32 %v407_v18, 0.0  ;;  %v441_v25 = vld [vmem:[%s1334_s21 + $0x10] sm:$0xff]  ;;  %v449_v26 = vmax.f32 %v440_v22, 0.0  ;;  %v458_v27 = vld [vmem:[%s1341_s24] sm:$0xff]  ;;  %v459_v28 = vld [vmem:[%s1341_s24 + $0x8] sm:$0x1] }
  0x14   : > { %v450_v31 = vmax.f32 %v441_v25, 0.0  ;;  %v460_v32 = vld [vmem:[%s1341_s24 + $0x10] sm:$0xff]  ;;  %v474_v33 = vmax.f32 %v458_v27, 0.0  ;;  %v475_v34 = vmax.f32 %v459_v28, 0.0  ;;  %v490_v35 = vld [vmem:[%s1346_s27] sm:$0xff]  ;;  %v512_v36 = vmul.f32 %v1336_v10, %v422_v19 }
  0x15   : > { %v476_v37 = vmax.f32 %v460_v32, 0.0  ;;  %v498_v38 = vmax.f32 %v490_v35, 0.0  ;;  %v513_v39 = vmul.f32 %v1336_v10, %v1356_v21  ;;  %v524_v40 = vmul.f32 %v1351_v14, %v449_v26  ;;  %v408_v58 = vld [vmem:[%s1329_s18 + $0x20] sm:$0xff]  ;;  %v409_v63 = vld [vmem:[%s1329_s18 + $0x28] sm:$0x1]  ;;  %v491_v6 = vld [vmem:[%s1346_s27 + $0x10] sm:$0xff] }
  0x16   : > { %v525_v41 = vmul.f32 %v1351_v14, %v450_v31  ;;  %v544_v42 = vmul.f32 %v1353_v15, %v422_v19  ;;  %v545_v43 = vmul.f32 %v1353_v15, %v423_v20  ;;  %v546_v44 = vmul.f32 %v1353_v15, %v1356_v21  ;;  %v442_v0 = vld [vmem:[%s1334_s21 + $0x20] sm:$0xff]  ;;  %v461_v5 = vld [vmem:[%s1341_s24 + $0x18] sm:$0x1]  ;;  %v410_v35 = vld [vmem:[%s1329_s18 + $0x30] sm:$0xff] }
  0x17   : > { %v532_v46 = vadd.f32 %v524_v40, %v512_v36  ;;  %v547_v47 = vmul.f32 %v1353_v15, %v425_v24  ;;  %v621_v55 = vmul.f32 %v1359_v23, %v474_v33  ;;  %v661_v56 = vmul.f32 %v1366_v30, %v474_v33  ;;  %v443_v40 = vld [vmem:[%s1334_s21 + $0x30] sm:$0xff] }
  0x18   : > { %v533_v50 = vadd.f32 %v525_v41, %v513_v39  ;;  %v577_v51 = vrot.slane %v544_v42, 1  ;;  %v578_v52 = vrot.slane %v545_v43, 1  ;;  %v580_v53 = vrot.slane %v546_v44, 1  ;;  %v411_v39 = vld [vmem:[%s1329_s18 + $0x38] sm:$0x1]  ;;  %v462_v41 = vld [vmem:[%s1341_s24 + $0x20] sm:$0xff] }
  0x19   : > { %v581_v54 = vrot.slane %v547_v47, 1  ;;  %v662_v57 = vmul.f32 %v1366_v30, %v475_v34  ;;  %v622_v60 = vmul.f32 %v1359_v23, %v476_v37  ;;  %v641_v61 = vmul.f32 %v1364_v29, %v498_v38 }
  0x1a   : > { %v579_v59 = vsel %vm576_vm1, %v577_v51, %v578_v52  ;;  %v777_v62 = vmul.f32 %v1382_v45, %v1356_v21  ;;  %v693_v3 = vrot.slane %v661_v56, 1  ;;  %v778_v8 = vmul.f32 %v1382_v45, %v425_v24  ;;  %v463_v52 = vld [vmem:[%s1341_s24 + $0x28] sm:$0x1] }
  0x1b   : > { %v582_v1 = vsel %vm576_vm1, %v580_v53, %v581_v54  ;;  %v609_v2 = vadd.f32 %v579_v59, %v532_v46  ;;  %v694_v4 = vrot.slane %v662_v57, 1  ;;  %v426_v11 = vmax.f32 %v408_v58, 0.0  ;;  %v492_v53 = vld [vmem:[%s1346_s27 + $0x20] sm:$0xff] }
  0x1c   : > { %v610_v7 = vadd.f32 %v582_v1, %v533_v50  ;;  %v809_v9 = vrot.slane %v777_v62, 1  ;;  %v427_v16 = vmax.f32 %v409_v63, 0.0  ;;  %v451_v17 = vmax.f32 %v442_v0, 0.0  ;;  %v1429_v62 = vld [vmem:[%s1627_s5] ss:$0 sm:$0xff] }
  0x1d   : > { %v629_v12 = vadd.f32 %v621_v55, %v609_v2  ;;  %v695_v13 = vsel %vm576_vm1, %v693_v3, %v694_v4  ;;  %v810_v19 = vrot.slane %v778_v8, 1  ;;  %v477_v20 = vmax.f32 %v461_v5, 0.0 }
  0x1e   : > { %v630_v18 = vadd.f32 %v622_v60, %v610_v7  ;;  %v499_v22 = vmax.f32 %v491_v6, 0.0  ;;  %v737_v26 = vmul.f32 %v1385_v48, %v1356_v21  ;;  %v757_v24 = vmul.f32 %v1387_v49, %v450_v31 }
  0x1f   : > { %v649_v25 = vadd.f32 %v641_v61, %v629_v12  ;;  %v514_v27 = vmul.f32 %v1336_v10, %v426_v11  ;;  %v526_v28 = vmul.f32 %v1351_v14, %v451_v17  ;;  %v663_v33 = vmul.f32 %v1366_v30, %v476_v37 }
  0x20   : > { %v642_v32 = vmul.f32 %v1364_v29, %v499_v22  ;;  %v664_v34 = vmul.f32 %v1366_v30, %v477_v20  ;;  %v811_v38 = vsel %vm576_vm1, %v809_v9, %v810_v19  ;;  %v549_v21 = vmul.f32 %v1353_v15, %v427_v16 }
  0x21   : > { %v725_v36 = vadd.f32 %v695_v13, %v649_v25  ;;  %v738_v31 = vmul.f32 %v1385_v48, %v426_v11  ;;  %v696_v43 = vrot.slane %v663_v33, 1  ;;  %v758_v37 = vmul.f32 %v1387_v49, %v451_v17  ;;  %v413_v25 = vld [vmem:[%s1329_s18 + $0x48] sm:$0x1]  ;;  %v464_v33 = vld [vmem:[%s1341_s24 + $0x30] sm:$0xff] }
  0x22   : > { %v650_v42 = vadd.f32 %v642_v32, %v630_v18  ;;  %v697_v44 = vrot.slane %v664_v34, 1  ;;  %v779_v47 = vmul.f32 %v1382_v45, %v426_v11  ;;  %v780_v50 = vmul.f32 %v1382_v45, %v427_v16 }
  0x23   : > { %v745_v46 = vadd.f32 %v737_v26, %v725_v36  ;;  %v428_v51 = vmax.f32 %v410_v35, 0.0  ;;  %v429_v55 = vmax.f32 %v411_v39, 0.0  ;;  %v452_v56 = vmax.f32 %v443_v40, 0.0  ;;  %v444_v26 = vld [vmem:[%s1334_s21 + $0x40] sm:$0xff] }
  0x24   : > { %v698_v54 = vsel %vm576_vm1, %v696_v43, %v697_v44  ;;  %v478_v57 = vmax.f32 %v462_v41, 0.0  ;;  %v812_v60 = vrot.slane %v779_v47, 1  ;;  %v813_v61 = vrot.slane %v780_v50, 1  ;;  %v412_v41 = vld [vmem:[%s1329_s18 + $0x40] sm:$0xff] }
  0x25   : > { %v765_v58 = vadd.f32 %v757_v24, %v745_v46  ;;  %v726_v59 = vadd.f32 %v698_v54, %v650_v42  ;;  %v479_v63 = vmax.f32 %v463_v52, 0.0  ;;  %v500_v0 = vmax.f32 %v492_v53, 0.0 }
  0x26   : > { %v515_v1 = vmul.f32 %v1336_v10, %v428_v51  ;;  %v527_v2 = vmul.f32 %v1351_v14, %v452_v56  ;;  %v584_v4 = vrot.slane %v549_v21, 1  ;;  %v548_v6 = vmul.f32 %v1353_v15, %v426_v11  ;;  %v465_v21 = vld [vmem:[%s1341_s24 + $0x38] sm:$0x1] }
  0x27   : > { %v841_v3 = vadd.f32 %v811_v38, %v765_v58  ;;  %v746_v5 = vadd.f32 %v738_v31, %v726_v59  ;;  %v534_v7 = vadd.f32 %v526_v28, %v514_v27  ;;  %v814_v8 = vsel %vm576_vm1, %v812_v60, %v813_v61  ;;  %v493_v31 = vld [vmem:[%s1346_s27 + $0x30] sm:$0xff] }
  0x28   : > { %v535_v9 = vadd.f32 %v527_v2, %v515_v1  ;;  %v551_v12 = vmul.f32 %v1353_v15, %v429_v55  ;;  %v583_v17 = vrot.slane %v548_v6, 1  ;;  %v665_v18 = vmul.f32 %v1366_v30, %v478_v57 }
  0x29   : > { %v856_v13 = vadd.f32 %v1429_v62, %v841_v3  ;;  %v766_v16 = vadd.f32 %v758_v37, %v746_v5  ;;  %v623_v20 = vmul.f32 %v1359_v23, %v478_v57  ;;  %v643_v11 = vmul.f32 %v1364_v29, %v500_v0  ;;  %v414_v0 = vld [vmem:[%s1329_s18 + $0x50] sm:$0xff] }
  0x2a   : > { %v587_v19 = vrot.slane %v551_v12, 1  ;;  %v666_v22 = vmul.f32 %v1366_v30, %v479_v63  ;;  %v585_v27 = vsel %vm576_vm1, %v583_v17, %v584_v4  ;;  %v699_v28 = vrot.slane %v665_v18, 1  ;;  %v1466_v4 = vld [vmem:[%s1334_s21 + $0x50] sm:$0xff]  ;;  %v415_v12 = vld [vmem:[%s1329_s18 + $0x58] sm:$0x1] }
  0x2b   : > { %1228 = vmatprep.mubr.msk.f32.mxu0 %vm872_vm2, %v856_v13  ;;  %v842_v24 = vadd.f32 %v814_v8, %v766_v16  ;;  %v781_v32 = vmul.f32 %v1382_v45, %v428_v51  ;;  %v611_v34 = vadd.f32 %v585_v27, %v534_v7  ;;  %v739_v36 = vmul.f32 %v1385_v48, %v428_v51 }
  0x2c   : > { %v700_v35 = vrot.slane %v666_v22, 1  ;;  %v782_v38 = vmul.f32 %v1382_v45, %v429_v55  ;;  %v431_v42 = vmax.f32 %v413_v25, 0.0  ;;  %v453_v43 = vmax.f32 %v444_v26, 0.0 }
  0x2d   : > { %v857_v39 = vadd.f32 %v1429_v62, %v842_v24  ;;  %v815_v40 = vrot.slane %v781_v32, 1  ;;  %v631_v44 = vadd.f32 %v623_v20, %v611_v34  ;;  %v759_v37 = vmul.f32 %v1387_v49, %v452_v56  ;;  %v466_v20 = vld [vmem:[%s1341_s24 + $0x40] sm:$0xff]  ;;  %v1479_v24 = vld [vmem:[%s1341_s24 + $0x50] sm:$0xff] }
  0x2e   : > { %v816_v46 = vrot.slane %v782_v38, 1  ;;  %v480_v47 = vmax.f32 %v464_v33, 0.0  ;;  %v701_v50 = vsel %vm576_vm1, %v699_v28, %v700_v35  ;;  %v481_v52 = vmax.f32 %v465_v21, 0.0 }
  0x2f   : > { %1229 = vmatmul.mubr.msk.f32.vlgmr.msra.gmra.mrb[0].mxu0 %vm872_vm2, %v857_v39  ;;  %v501_v53 = vmax.f32 %v493_v31, 0.0  ;;  %v550_v54 = vmul.f32 %v1353_v15, %v428_v51  ;;  %v651_v55 = vadd.f32 %v643_v11, %v631_v44  ;;  %v430_v57 = vmax.f32 %v412_v41, 0.0  ;;  %v467_v11 = vld [vmem:[%s1341_s24 + $0x48] sm:$0x1] }
  0x30   : > { %v528_v58 = vmul.f32 %v1351_v14, %v453_v43  ;;  %v553_v59 = vmul.f32 %v1353_v15, %v431_v42  ;;  %v817_v56 = vsel %vm576_vm1, %v815_v40, %v816_v46  ;;  %v667_v61 = vmul.f32 %v1366_v30, %v480_v47 }
  0x31   : > { %v586_v60 = vrot.slane %v550_v54, 1  ;;  %v668_v63 = vmul.f32 %v1366_v30, %v481_v52  ;;  %v727_v1 = vadd.f32 %v701_v50, %v651_v55  ;;  %v624_v51 = vmul.f32 %v1359_v23, %v480_v47 }
  0x32   : > { %v590_v2 = vrot.slane %v553_v59, 1  ;;  %v644_v3 = vmul.f32 %v1364_v29, %v501_v53  ;;  %v702_v6 = vrot.slane %v667_v61, 1  ;;  %v783_v8 = vmul.f32 %v1382_v45, %v430_v57 }
  0x33   : > { %v588_v5 = vsel %vm576_vm1, %v586_v60, %v587_v19  ;;  %v703_v7 = vrot.slane %v668_v63, 1  ;;  %v747_v13 = vadd.f32 %v739_v36, %v727_v1  ;;  %v784_v17 = vmul.f32 %v1382_v45, %v431_v42  ;;  %v416_v1 = vld [vmem:[%s1329_s18 + $0x60] sm:$0xff] }
  0x34   : > { %v612_v16 = vadd.f32 %v588_v5, %v535_v9  ;;  %v432_v18 = vmax.f32 %v414_v0, 0.0  ;;  %v740_v25 = vmul.f32 %v1385_v48, %v430_v57  ;;  %v760_v26 = vmul.f32 %v1387_v49, %v453_v43  ;;  %v494_v9 = vld [vmem:[%s1346_s27 + $0x40] sm:$0xff] }
  0x35   : > { %v704_v22 = vsel %vm576_vm1, %v702_v6, %v703_v7  ;;  %v454_v19 = vmax.f32 %v1466_v4, 0.0  ;;  %v767_v27 = vadd.f32 %v759_v37, %v747_v13  ;;  %v818_v32 = vrot.slane %v783_v8, 1  ;;  %v417_v6 = vld [vmem:[%s1329_s18 + $0x68] sm:$0x1]  ;;  %v446_v13 = vld [vmem:[%s1334_s21 + $0x60] sm:$0xff] }
  0x36   : > { %v632_v28 = vadd.f32 %v624_v51, %v612_v16  ;;  %v433_v33 = vmax.f32 %v415_v12, 0.0  ;;  %v819_v34 = vrot.slane %v784_v17, 1  ;;  %v482_v35 = vmax.f32 %v466_v20, 0.0  ;;  %v469_v16 = vld [vmem:[%s1341_s24 + $0x58] sm:$0x1] }
  0x37   : > { %v483_v36 = vmax.f32 %v467_v11, 0.0  ;;  %v516_v38 = vmul.f32 %v1336_v10, %v430_v57  ;;  %v843_v21 = vadd.f32 %v817_v56, %v767_v27  ;;  %v484_v39 = vmax.f32 %v1479_v24, 0.0 }
  0x38   : > { %v652_v31 = vadd.f32 %v644_v3, %v632_v28  ;;  %v517_v40 = vmul.f32 %v1336_v10, %v432_v18  ;;  %v502_v41 = vmax.f32 %v494_v9, 0.0  ;;  %v529_v42 = vmul.f32 %v1351_v14, %v454_v19 }
  0x39   : > { %v552_v43 = vmul.f32 %v1353_v15, %v430_v57  ;;  %v554_v44 = vmul.f32 %v1353_v15, %v432_v18  ;;  %v858_v37 = vadd.f32 %v1429_v62, %v843_v21  ;;  %v536_v47 = vadd.f32 %v528_v58, %v516_v38 }
  0x3a   : > { %v728_v46 = vadd.f32 %v704_v22, %v652_v31  ;;  %v555_v50 = vmul.f32 %v1353_v15, %v433_v33  ;;  %v820_v52 = vsel %vm576_vm1, %v818_v32, %v819_v34  ;;  %v537_v53 = vadd.f32 %v529_v42, %v517_v40  ;;  %v418_v42 = vld [vmem:[%s1329_s18 + $0x70] sm:$0xff] }
  0x3b   : > { %v589_v54 = vrot.slane %v552_v43, 1  ;;  %v592_v55 = vrot.slane %v554_v44, 1  ;;  %1231 = vmatprep.mubr.msk.f32.mxu0 %vm872_vm2, %v858_v37  ;;  %v625_v57 = vmul.f32 %v1359_v23, %v482_v35  ;;  %v669_v60 = vmul.f32 %v1366_v30, %v482_v35 }
  0x3c   : > { %v748_v59 = vadd.f32 %v740_v25, %v728_v46  ;;  %v593_v56 = vrot.slane %v555_v50, 1  ;;  %v626_v61 = vmul.f32 %v1359_v23, %v484_v39  ;;  %v645_v63 = vmul.f32 %v1364_v29, %v502_v41  ;;  %v495_v25 = vld [vmem:[%s1346_s27 + $0x50] sm:$0xff]  ;;  %v419_v46 = vld [vmem:[%s1329_s18 + $0x78] sm:$0x1] }
  0x3d   : > { %v591_v58 = vsel %vm576_vm1, %v589_v54, %v590_v2  ;;  %v670_v0 = vmul.f32 %v1366_v30, %v483_v36  ;;  %v705_v5 = vrot.slane %v669_v60, 1  ;;  %v785_v12 = vmul.f32 %v1382_v45, %v432_v18  ;;  %v470_v54 = vld [vmem:[%s1341_s24 + $0x60] sm:$0xff]  ;;  %v471_v60 = vld [vmem:[%s1341_s24 + $0x68] sm:$0x1] }
  0x3e   : > { %v768_v51 = vadd.f32 %v760_v26, %v748_v59  ;;  %v594_v3 = vsel %vm576_vm1, %v592_v55, %v593_v56  ;;  %v613_v4 = vadd.f32 %v591_v58, %v536_v47  ;;  %v786_v2 = vmul.f32 %v1382_v45, %v433_v33  ;;  %v1522_v47 = vld [vmem:[%s1334_s21 + $0x70] sm:$0xff] }
  0x3f   : > { %v614_v7 = vadd.f32 %v594_v3, %v537_v53  ;;  %v706_v8 = vrot.slane %v670_v0, 1  ;;  %v741_v11 = vmul.f32 %v1385_v48, %v432_v18  ;;  %v434_v22 = vmax.f32 %v416_v1, 0.0  ;;  %v496_v1 = vld [vmem:[%s1346_s27 + $0x60] sm:$0xff] }
  0x40   : > { %v844_v17 = vadd.f32 %v820_v52, %v768_v51  ;;  %v633_v20 = vadd.f32 %v625_v57, %v613_v4  ;;  %v821_v24 = vrot.slane %v785_v12, 1  ;;  %v822_v27 = vrot.slane %v786_v2, 1 }
  0x41   : > { %v707_v26 = vsel %vm576_vm1, %v705_v5, %v706_v8  ;;  %v435_v28 = vmax.f32 %v417_v6, 0.0  ;;  %v455_v34 = vmax.f32 %v446_v13, 0.0  ;;  %v485_v33 = vmax.f32 %v469_v16, 0.0 }
  0x42   : > { %v859_v32 = vadd.f32 %v1429_v62, %v844_v17  ;;  %v653_v9 = vadd.f32 %v645_v63, %v633_v20  ;;  %v634_v35 = vadd.f32 %v626_v61, %v614_v7  ;;  %v761_v36 = vmul.f32 %v1387_v49, %v454_v19 }
  0x43   : > { %v823_v18 = vsel %vm576_vm1, %v821_v24, %v822_v27  ;;  %v503_v38 = vmax.f32 %v495_v25, 0.0  ;;  %v518_v31 = vmul.f32 %v1336_v10, %v434_v22  ;;  %v671_v40 = vmul.f32 %v1366_v30, %v484_v39 }
  0x44   : > { %1232 = vmatmul.mubr.msk.f32.gmra.mrb[2].mxu0 %vm872_vm2, %v859_v32  ;;  %v729_v21 = vadd.f32 %v707_v26, %v653_v9  ;;  %v672_v41 = vmul.f32 %v1366_v30, %v485_v33  ;;  %v530_v43 = vmul.f32 %v1351_v14, %v455_v34  ;;  %v557_v44 = vmul.f32 %v1353_v15, %v435_v28  ;;  %v420_v33 = vld [vmem:[%s1329_s18 + $0x80] sm:$0xff] }
  0x45   : > { %v646_v19 = vmul.f32 %v1364_v29, %v503_v38  ;;  %v742_v37 = vmul.f32 %v1385_v48, %v434_v22  ;;  %v708_v52 = vrot.slane %v671_v40, 1  ;;  %v762_v39 = vmul.f32 %v1387_v49, %v455_v34  ;;  %v497_v40 = vld [vmem:[%s1346_s27 + $0x70] sm:$0xff] }
  0x46   : > { %v749_v50 = vadd.f32 %v741_v11, %v729_v21  ;;  %v709_v53 = vrot.slane %v672_v41, 1  ;;  %v787_v59 = vmul.f32 %v1382_v45, %v434_v22  ;;  %v788_v56 = vmul.f32 %v1382_v45, %v435_v28 }
  0x47   : > { %v654_v55 = vadd.f32 %v646_v19, %v634_v35  ;;  %v436_v57 = vmax.f32 %v418_v42, 0.0  ;;  %v437_v63 = vmax.f32 %v419_v46, 0.0  ;;  %v456_v0 = vmax.f32 %v1522_v47, 0.0  ;;  %v472_v35 = vld [vmem:[%s1341_s24 + $0x70] sm:$0xff] }
  0x48   : > { %v769_v58 = vadd.f32 %v761_v36, %v749_v50  ;;  %v710_v61 = vsel %vm576_vm1, %v708_v52, %v709_v53  ;;  %v824_v3 = vrot.slane %v787_v59, 1  ;;  %v825_v4 = vrot.slane %v788_v56, 1 }
  0x49   : > { %v730_v51 = vadd.f32 %v710_v61, %v654_v55  ;;  %v486_v5 = vmax.f32 %v470_v54, 0.0  ;;  %v596_v7 = vrot.slane %v557_v44, 1  ;;  %v487_v8 = vmax.f32 %v471_v60, 0.0 }
  0x4a   : > { %v845_v6 = vadd.f32 %v823_v18, %v769_v58  ;;  %v538_v12 = vadd.f32 %v530_v43, %v518_v31  ;;  %v504_v13 = vmax.f32 %v496_v1, 0.0  ;;  %v556_v16 = vmul.f32 %v1353_v15, %v434_v22  ;;  %v473_v31 = vld [vmem:[%s1341_s24 + $0x78] sm:$0x1] }
  0x4b   : > { %v750_v2 = vadd.f32 %v742_v37, %v730_v51  ;;  %v826_v20 = vsel %vm576_vm1, %v824_v3, %v825_v4  ;;  %v519_v11 = vmul.f32 %v1336_v10, %v436_v57  ;;  %v531_v25 = vmul.f32 %v1351_v14, %v456_v0  ;;  %v421_v14 = vld [vmem:[%s1329_s18 + $0x88] sm:$0x1]  ;;  %s1581_s18 = scalar_lea.vmem %s1630_s8, %s1216_s13 }
  0x4c   : > { %v860_v17 = vadd.f32 %v1429_v62, %v845_v6  ;;  %v559_v24 = vmul.f32 %v1353_v15, %v437_v63  ;;  %v595_v27 = vrot.slane %v556_v16, 1  ;;  %v673_v28 = vmul.f32 %v1366_v30, %v486_v5 }
  0x4d   : > { %v770_v26 = vadd.f32 %v762_v39, %v750_v2  ;;  %v627_v22 = vmul.f32 %v1359_v23, %v486_v5  ;;  %v674_v32 = vmul.f32 %v1366_v30, %v487_v8  ;;  %v539_v36 = vadd.f32 %v531_v25, %v519_v11 }
  0x4e   : > { %1234 = vmatprep.mubr.msk.f32.mxu1 %vm872_vm2, %v860_v17  ;;  %v597_v34 = vsel %vm576_vm1, %v595_v27, %v596_v7  ;;  %v711_v10 = vrot.slane %v673_v28, 1  ;;  %v647_v38 = vmul.f32 %v1364_v29, %v504_v13  ;;  %v599_v42 = vrot.slane %v559_v24, 1 }
  0x4f   : > { %v846_v9 = vadd.f32 %v826_v20, %v770_v26  ;;  %v615_v18 = vadd.f32 %v597_v34, %v538_v12  ;;  %v712_v21 = vrot.slane %v674_v32, 1  ;;  %v789_v43 = vmul.f32 %v1382_v45, %v436_v57 }
  0x50   : > { %v790_v44 = vmul.f32 %v1382_v45, %v437_v63  ;;  %v438_v37 = vmax.f32 %v420_v33, 0.0  ;;  %v439_v46 = vmax.f32 %v421_v14, 0.0  ;;  %v488_v47 = vmax.f32 %v472_v35, 0.0 }
  0x51   : > { %v861_v41 = vadd.f32 %v1429_v62, %v846_v9  ;;  %v635_v19 = vadd.f32 %v627_v22, %v615_v18  ;;  %v713_v50 = vsel %vm576_vm1, %v711_v10, %v712_v21  ;;  %v489_v52 = vmax.f32 %v473_v31, 0.0  ;;  %v1204_v9 = vld [vmem:[%s1629_s7] ss:$0 sm:$0xff] }
  0x52   : > { %v505_v53 = vmax.f32 %v497_v40, 0.0  ;;  %v558_v39 = vmul.f32 %v1353_v15, %v436_v57  ;;  %v743_v55 = vmul.f32 %v1385_v48, %v436_v57  ;;  %v763_v59 = vmul.f32 %v1387_v49, %v456_v0  ;;  %v448_v15 = vld [vmem:[%s1334_s21 + $0x80] sm:$0xff] }
  0x53   : > { %1235 = vmatmul.mubr.msk.f32.vlgmr.msra.gmra.mrb[0].mxu1 %vm872_vm2, %v861_v41  ;;  %v655_v54 = vadd.f32 %v647_v38, %v635_v19  ;;  %v675_v56 = vmul.f32 %v1366_v30, %v488_v47  ;;  %v827_v60 = vrot.slane %v789_v43, 1  ;;  %v828_v58 = vrot.slane %v790_v44, 1 }
  0x54   : > { %v598_v61 = vrot.slane %v558_v39, 1  ;;  %v676_v63 = vmul.f32 %v1366_v30, %v489_v52  ;;  %v628_v51 = vmul.f32 %v1359_v23, %v488_v47  ;;  %v791_v3 = vmul.f32 %v1382_v45, %v438_v37 }
  0x55   : > { %v731_v1 = vadd.f32 %v713_v50, %v655_v54  ;;  %v792_v4 = vmul.f32 %v1382_v45, %v439_v46  ;;  %v648_v57 = vmul.f32 %v1364_v29, %v505_v53  ;;  %v714_v0 = vrot.slane %v675_v56, 1 }
  0x56   : > { %v600_v5 = vsel %vm576_vm1, %v598_v61, %v599_v42  ;;  %v715_v6 = vrot.slane %v676_v63, 1  ;;  %v830_v12 = vrot.slane %v791_v3, 1  ;;  %v829_v30 = vsel %vm576_vm1, %v827_v60, %v828_v58 }
  0x57   : > { %v751_v7 = vadd.f32 %v743_v55, %v731_v1  ;;  %v616_v8 = vadd.f32 %v600_v5, %v539_v36  ;;  %v831_v2 = vrot.slane %v792_v4, 1  ;;  %v457_v16 = vmax.f32 %v448_v15, 0.0 }
  0x58   : > { %v716_v45 = vsel %vm576_vm1, %v714_v0, %v715_v6  ;;  %v744_v29 = vmul.f32 %v1385_v48, %v438_v37 }
  0x59   : > { %v771_v13 = vadd.f32 %v763_v59, %v751_v7  ;;  %v636_v23 = vadd.f32 %v628_v51, %v616_v8  ;;  %v832_v17 = vsel %vm576_vm1, %v830_v12, %v831_v2  ;;  %v764_v24 = vmul.f32 %v1387_v49, %v457_v16 }
  0x5b   : > { %v847_v20 = vadd.f32 %v829_v30, %v771_v13  ;;  %v656_v11 = vadd.f32 %v648_v57, %v636_v23 }
  0x5d   : > { %v862_v25 = vadd.f32 %v1429_v62, %v847_v20  ;;  %v732_v26 = vadd.f32 %v716_v45, %v656_v11 }
  0x5f   : > { %1237 = vmatprep.mubr.msk.f32.mxu1 %vm872_vm2, %v862_v25  ;;  %v752_v27 = vadd.f32 %v744_v29, %v732_v26 }
  0x61   : > { %v772_v28 = vadd.f32 %v764_v24, %v752_v27 }
  0x63   : > { %v848_v22 = vadd.f32 %v832_v17, %v772_v28 }
  0x65   : > { %v863_v32 = vadd.f32 %v1429_v62, %v848_v22 }
  0x67   : > { %1238 = vmatmul.mubr.msk.f32.gmra.mrb[2].mxu1 %vm872_vm2, %v863_v32 }
 0x102   : > { %v1230_v48 = vpop.f32.mrb[0].mxu0 }
 0x103   : > { %v973_v49 = vadd.f32 %v1230_v48, %v1204_v9  ;;  %v967_v34 = vpop.f32.mrb[1].mxu0 }
 0x104   : > { %v968_v62 = vadd.f32 %v1204_v9, %v967_v34 }
 0x105   : > { %v1008_v10 = vsel %vm1006_vm3, %v973_v49, 0.0  ;;  %v1031_v33 = vmul.f32 %v973_v49, %v973_v49  ;;  %1061 = vst.msk [vmem:[%s1581_s18 + $0x8] sm:$0xff] %vm1006_vm3, %v973_v49 }
 0x106   : > { %v1007_v14 = vsel %vm1006_vm3, %v968_v62, 0.0  ;;  %v1030_v35 = vmul.f32 %v968_v62, %v968_v62  ;;  %1060 = vst.msk [vmem:[%s1581_s18] sm:$0xff] %vm1006_vm3, %v968_v62 }
 0x107   : > { %v1039_v36 = vsel %vm1006_vm3, %v1031_v33, 0.0  ;;  %v1009_v18 = vadd.f32 %v1008_v10, %v1007_v14 }
 0x108   : > { %v1038_v38 = vsel %vm1006_vm3, %v1030_v35, 0.0 }
 0x109   : > { %v1040_v21 = vadd.f32 %v1039_v36, %v1038_v38 }
 0x117   : > { %v1233_v31 = vpop.f32.mrb[2].mxu0 }
 0x118   : > { %v983_v40 = vadd.f32 %v1233_v31, %v1204_v9  ;;  %v977_v41 = vpop.f32.mrb[3].mxu0 }
 0x119   : > { %v978_v42 = vadd.f32 %v1204_v9, %v977_v41 }
 0x11a   : > { %1063 = vst.msk [vmem:[%s1581_s18 + $0x18] sm:$0xff] %vm1006_vm3, %v983_v40  ;;  %v1033_v43 = vmul.f32 %v983_v40, %v983_v40  ;;  %v1012_v46 = vsel %vm1006_vm3, %v983_v40, 0.0 }
 0x11b   : > { %v1010_v44 = vsel %vm1006_vm3, %v978_v42, 0.0  ;;  %v1032_v19 = vmul.f32 %v978_v42, %v978_v42  ;;  %1062 = vst.msk [vmem:[%s1581_s18 + $0x10] sm:$0xff] %vm1006_vm3, %v978_v42 }
 0x11c   : > { %v1011_v37 = vadd.f32 %v1010_v44, %v1009_v18  ;;  %v1043_v53 = vsel %vm1006_vm3, %v1033_v43, 0.0 }
 0x11d   : > { %v1041_v47 = vsel %vm1006_vm3, %v1032_v19, 0.0 }
 0x11e   : > { %v1042_v50 = vadd.f32 %v1041_v47, %v1040_v21  ;;  %v1013_v52 = vadd.f32 %v1012_v46, %v1011_v37 }
 0x120   : > { %v1044_v39 = vadd.f32 %v1043_v53, %v1042_v50 }
 0x126   : > { %v1236_v54 = vpop.f32.mrb[0].mxu1 }
 0x127   : > { %v993_v55 = vadd.f32 %v1236_v54, %v1204_v9  ;;  %v987_v59 = vpop.f32.mrb[1].mxu1 }
 0x128   : > { %v988_v56 = vadd.f32 %v1204_v9, %v987_v59 }
 0x129   : > { %1065 = vst.msk [vmem:[%s1581_s18 + $0x28] sm:$0xff] %vm1006_vm3, %v993_v55  ;;  %v1035_v60 = vmul.f32 %v993_v55, %v993_v55  ;;  %v1016_v1 = vsel %vm1006_vm3, %v993_v55, 0.0 }
 0x12a   : > { %v1014_v58 = vsel %vm1006_vm3, %v988_v56, 0.0  ;;  %v1034_v61 = vmul.f32 %v988_v56, %v988_v56  ;;  %1064 = vst.msk [vmem:[%s1581_s18 + $0x20] sm:$0xff] %vm1006_vm3, %v988_v56 }
 0x12b   : > { %v1015_v63 = vadd.f32 %v1014_v58, %v1013_v52  ;;  %v1047_v15 = vsel %vm1006_vm3, %v1035_v60, 0.0 }
 0x12c   : > { %v1045_v51 = vsel %vm1006_vm3, %v1034_v61, 0.0 }
 0x12d   : > { %v1046_v3 = vadd.f32 %v1045_v51, %v1044_v39  ;;  %v1017_v4 = vadd.f32 %v1016_v1, %v1015_v63 }
 0x12f   : > { %v1048_v5 = vadd.f32 %v1047_v15, %v1046_v3 }
 0x13a   : > { %v1239_v57 = vpop.f32.mrb[2].mxu1 }
 0x13b   : > { %v1003_v0 = vadd.f32 %v1239_v57, %v1204_v9  ;;  %v997_v6 = vpop.f32.mrb[3].mxu1 }
 0x13c   : > { %v998_v7 = vadd.f32 %v1204_v9, %v997_v6 }
 0x13d   : > { %1067 = vst.msk [vmem:[%s1581_s18 + $0x38] sm:$0xff] %vm1006_vm3, %v1003_v0  ;;  %v1037_v8 = vmul.f32 %v1003_v0, %v1003_v0  ;;  %v1020_v13 = vsel %vm1006_vm3, %v1003_v0, 0.0 }
 0x13e   : > { %v1018_v12 = vsel %vm1006_vm3, %v998_v7, 0.0  ;;  %v1036_v2 = vmul.f32 %v998_v7, %v998_v7  ;;  %1066 = vst.msk [vmem:[%s1581_s18 + $0x30] sm:$0xff] %vm1006_vm3, %v998_v7 }
 0x13f   : > { %v1019_v30 = vadd.f32 %v1018_v12, %v1017_v4  ;;  %v1051_v45 = vsel %vm1006_vm3, %v1037_v8, 0.0 }
 0x140   : > { %v1049_v16 = vsel %vm1006_vm3, %v1036_v2, 0.0 }
 0x141   : > { %v1021_v23 = vadd.f32 %v1020_v13, %v1019_v30  ;;  %v1050_v17 = vadd.f32 %v1049_v16, %v1048_v5 }
 0x143   : > { %v1022_v20 = vrot.slane %v1021_v23, 4  ;;  %v1052_v11 = vadd.f32 %v1051_v45, %v1050_v17 }
 0x145   : > { %v1023_v29 = vadd.f32 %v1022_v20, %v1021_v23  ;;  %v1053_v25 = vrot.slane %v1052_v11, 4 }
 0x147   : > { %v1024_v26 = vrot.slane %v1023_v29, 2  ;;  %v1054_v24 = vadd.f32 %v1053_v25, %v1052_v11 }
 0x149   : > { %v1025_v27 = vadd.f32 %v1024_v26, %v1023_v29  ;;  %v1055_v28 = vrot.slane %v1054_v24, 2 }
 0x14b   : > { %v1026_v22 = vrot.slane %v1025_v27, 1  ;;  %v1056_v32 = vadd.f32 %v1055_v28, %v1054_v24 }
 0x14d   : > { %v1027_v9 = vadd.f32 %v1026_v22, %v1025_v27  ;;  %v1057_v48 = vrot.slane %v1056_v32, 1 }
 0x14f   : > { %1029 = vst.msk [vmem:[%s403_s22] sm:$0x1] %vm1028_vm4, %v1027_v9  ;;  %v1058_v49 = vadd.f32 %v1057_v48, %v1056_v32 }
 0x151   : > { %1059 = vst.msk [vmem:[%s403_s22 + $0x1] sm:$0x1] %vm1028_vm4, %v1058_v49 }
 0x152 PF: > { %s20_s30 = sadd.s32 1, %s1257_s30  }
 0x153   : > { %p17_p4 = scmp.ge.s32.totalorder %s20_s30, 4  }
 0x155   :  { %19 = sbr.rel (!%p17_p4) target bundleno = 1 (0x1), region = 103 }

// kernel: _lambda_.9
= control target key start
LH: loop header
LB: loop body
LE: loop exit
PB: predicated region body
PF: predicated region fallthrough
CT: control target
= control target key end

     0   :  { %s646_s27 = smov 0   ;;  %s717_s0 = inlined_call_operand.vmem [shape: f32[2,8,8,8], index: 0, kind: input, shape index: {}]   ;;  %s718_s1 = inlined_call_operand.vmem [shape: f32[2,2,8], index: 1, kind: input, shape index: {}]   ;;  %s719_s2 = inlined_call_operand.vmem [shape: f32[1,8], index: 2, kind: input, shape index: {}]   ;;  %s720_s3 = inlined_call_operand.vmem [shape: f32[1,8], index: 3, kind: input, shape index: {}]   ;;  %s721_s4 = inlined_call_operand.vmem [shape: f32[2,8,8,8], index: 4, kind: input, shape index: {}]   ;;  %s722_s5 = inlined_call_operand.vmem [shape: f32[2,2,8], index: 5, kind: input, shape index: {}]   ;;  %s723_s6 = inlined_call_operand.vmem [shape: f32[1,8], index: 6, kind: input, shape index: {}]   ;;  %s724_s7 = inlined_call_operand.vmem [shape: f32[1,8], index: 7, kind: input, shape index: {}]   ;;  %s725_s8 = inlined_call_operand.vmem [shape: f32[2,8,8,8], index: 8, kind: output, shape index: {}]  }
   0x1 LB: > { %s563_s28 = sadd.s32 4294967295, %s598_s27   ;;  %p567_p0 = scmp.ge.s32.totalorder %s598_s27, 1  ;;  %s598_s27 = sphi %s646_s27, %s18_s27  }
   0x2   : > { %p272_p1 = scmp.lt.s32.totalorder %s598_s27, 3 }
   0x4   : > { %p273_p2 = pnand %p567_p0, %p272_p1 }
   0x5   : > { %v326_v0 = vld [vmem:[%s718_s1] sm:$0x3] (!%p273_p2)  ;;  %v327_v1 = vld [vmem:[%s718_s1 + $0x2] sm:$0x3] (!%p273_p2)  ;;  %vm330_vm0 = vcmask (!%p273_p2), 58368   ;;  %v347_v22 = vlaneseq (!%p273_p2)  ;;  %p311_p3 = scmp.lt.s32.totalorder (!%p273_p2), %s563_s28, 1 }
   0x6   : > { %276 = sbr.rel (%p273_p2) target bundleno = 61 (0x3d), region = 52  ;;  %v331_v2 = vsel (!%p273_p2), %vm330_vm0, %v326_v0, 0.0  ;;  %v332_v3 = vsel (!%p273_p2), %vm330_vm0, %v327_v1, 0.0  ;;  %v399_v5 = vld [vmem:[%s722_s5] sm:$0x3] (!%p273_p2)  ;;  %vm487_vm1 = vcmask (!%p273_p2), 64512  }
   0x7   : > { %v333_v4 = vadd.f32 (!%p273_p2), %v332_v3, %v331_v2  ;;  %v400_v6 = vld [vmem:[%s722_s5 + $0x2] sm:$0x3] (!%p273_p2)  ;;  %v403_v8 = vsel (!%p273_p2), %vm330_vm0, %v399_v5, 0.0  ;;  %v600_v20 = vmov (!%p273_p2), 1966171168   ;;  %v348_v26 = vshrl.u32 (!%p273_p2), %v347_v22, 7 }
   0x8   : > { %v404_v9 = vsel (!%p273_p2), %vm330_vm0, %v400_v6, 0.0  ;;  %v345_v21 = vunpack.c.l.s4 (!%p273_p2), %v600_v20  ;;  %v328_v32 = vld [vmem:[%s719_s2] sm:$0x1] (!%p273_p2) }
   0x9   : > { %v334_v7 = vmul.f32 (!%p273_p2), 0.0078125, %v333_v4  ;;  %v405_v10 = vadd.f32 (!%p273_p2), %v404_v9, %v403_v8  ;;  %v374_v35 = vsub.s32 (!%p273_p2), 0, %v348_v26  ;;  %v329_v37 = vld [vmem:[%s720_s3] sm:$0x1] (!%p273_p2) }
   0xa   : > { %v346_v25 = vunpack.c.0.s8 (!%p273_p2), %v345_v21  ;;  %v401_v39 = vld [vmem:[%s723_s6] sm:$0x1] (!%p273_p2) }
   0xb   : > { %v335_v11 = vmul.f32 (!%p273_p2), %v334_v7, %v334_v7  ;;  %v406_v12 = vmul.f32 (!%p273_p2), 0.0078125, %v405_v10  ;;  %v402_v46 = vld [vmem:[%s724_s7] sm:$0x1] (!%p273_p2) }
   0xc   : > { %v349_v27 = vsub.s32 (!%p273_p2), %v346_v25, %v348_v26 }
   0xd   : > { %v337_v13 = vrot.slane %v335_v11, 7  ;;  %v407_v14 = vmul.f32 %v406_v12, %v406_v12  ;;  %s727_s28 = smov (!%p311_p3, %s563_s28), 1 }
   0xe   : > { %s670_s15 = sshll.u32 %s727_s28, 6 }
   0xf   : > { %v339_v15 = vsub.f32 %v334_v7, %v337_v13  ;;  %v409_v16 = vrot.slane %v407_v14, 7  ;;  %s315_s20 = scalar_lea.vmem %s717_s0, %s670_s15  ;;  %s689_s28 = scalar_lea.vmem %s721_s4, %s670_s15 }
  0x10   : > { %v363_v40 = vld [vmem:[%s315_s20] sm:$0xff]  ;;  %v364_v42 = vld [vmem:[%s315_s20 + $0x8] sm:$0xff]  ;;  %v365_v43 = vld [vmem:[%s315_s20 + $0x10] sm:$0xff]  ;;  %s325_s11 = scalar_lea.vmem %s725_s8, %s670_s15 }
  0x11   : > { %v340_v17 = vmax.f32 %v339_v15, 0.0  ;;  %v411_v18 = vsub.f32 %v406_v12, %v409_v16  ;;  %v366_v47 = vld [vmem:[%s315_s20 + $0x18] sm:$0xff]  ;;  %v367_v48 = vld [vmem:[%s315_s20 + $0x20] sm:$0xff]  ;;  %v368_v50 = vld [vmem:[%s315_s20 + $0x28] sm:$0xff] }
  0x12   : > { %v369_v51 = vld [vmem:[%s315_s20 + $0x30] sm:$0xff]  ;;  %v370_v52 = vld [vmem:[%s315_s20 + $0x38] sm:$0xff]  ;;  %v435_v55 = vld [vmem:[%s689_s28] sm:$0xff] }
  0x13   : > { %v341_v19 = vadd.f32 1e-05, %v340_v17  ;;  %v412_v23 = vmax.f32 %v411_v18, 0.0  ;;  %v436_v57 = vld [vmem:[%s689_s28 + $0x8] sm:$0xff]  ;;  %v437_v59 = vld [vmem:[%s689_s28 + $0x10] sm:$0xff]  ;;  %v438_v1 = vld [vmem:[%s689_s28 + $0x18] sm:$0xff] }
  0x14   : > { %v439_v2 = vld [vmem:[%s689_s28 + $0x20] sm:$0xff]  ;;  %v440_v10 = vld [vmem:[%s689_s28 + $0x28] sm:$0xff]  ;;  %v441_v11 = vld [vmem:[%s689_s28 + $0x30] sm:$0xff] }
  0x15   : > { %588 = vrsqrt.f32 %v341_v19  ;;  %v413_v24 = vadd.f32 1e-05, %v412_v23 }
  0x17   : > { %590 = vrsqrt.f32 %v413_v24 }
  0x1f   : > { %v589_v28 = vpop.eup %588 }
  0x20   : > { %v350_v29 = vrot.slane %v589_v28, %v349_v27  ;;  %v442_v28 = vld [vmem:[%s689_s28 + $0x38] sm:$0xff] }
  0x21   : > { %v591_v30 = vpop.eup %590 }
  0x22   : > { %v351_v31 = vcombine.high %v350_v29, %v350_v29  ;;  %v422_v33 = vrot.slane %v591_v30, %v349_v27 }
  0x24   : > { %v358_v34 = vrot.slane %v351_v31, %v349_v27  ;;  %v423_v36 = vcombine.high %v422_v33, %v422_v33 }
  0x26   : > { %v360_v38 = vmul.f32 %v358_v34, %v328_v32  ;;  %v430_v41 = vrot.slane %v423_v36, %v349_v27 }
  0x28   : > { %v361_v44 = vmul.f32 %v360_v38, %v334_v7  ;;  %v375_v45 = vrot.slane %v360_v38, %v374_v35  ;;  %v432_v49 = vmul.f32 %v430_v41, %v401_v39 }
  0x2a   : > { %v362_v53 = vsub.f32 %v329_v37, %v361_v44  ;;  %v377_v54 = vmul.f32 %v375_v45, %v363_v40  ;;  %v378_v56 = vmul.f32 %v375_v45, %v364_v42  ;;  %v379_v58 = vmul.f32 %v375_v45, %v365_v43 }
  0x2b   : > { %v433_v60 = vmul.f32 %v432_v49, %v406_v12  ;;  %v447_v61 = vrot.slane %v432_v49, %v374_v35  ;;  %v380_v62 = vmul.f32 %v375_v45, %v366_v47  ;;  %v381_v63 = vmul.f32 %v375_v45, %v367_v48 }
  0x2c   : > { %v389_v0 = vrot.slane %v362_v53, %v374_v35  ;;  %v382_v3 = vmul.f32 %v375_v45, %v368_v50  ;;  %v383_v4 = vmul.f32 %v375_v45, %v369_v51  ;;  %v384_v5 = vmul.f32 %v375_v45, %v370_v52 }
  0x2d   : > { %v434_v6 = vsub.f32 %v402_v46, %v433_v60  ;;  %v449_v7 = vmul.f32 %v447_v61, %v435_v55  ;;  %v450_v8 = vmul.f32 %v447_v61, %v436_v57  ;;  %v451_v9 = vmul.f32 %v447_v61, %v437_v59 }
  0x2e   : > { %v391_v13 = vadd.f32 %v389_v0, %v377_v54  ;;  %v392_v12 = vadd.f32 %v389_v0, %v378_v56  ;;  %v393_v14 = vadd.f32 %v389_v0, %v379_v58  ;;  %v394_v15 = vadd.f32 %v389_v0, %v380_v62 }
  0x2f   : > { %v461_v16 = vrot.slane %v434_v6, %v374_v35  ;;  %v452_v17 = vmul.f32 %v447_v61, %v438_v1  ;;  %v395_v18 = vadd.f32 %v389_v0, %v381_v63  ;;  %v453_v19 = vmul.f32 %v447_v61, %v439_v2 }
  0x30   : > { %v396_v20 = vadd.f32 %v389_v0, %v382_v3  ;;  %v454_v21 = vmul.f32 %v447_v61, %v440_v10  ;;  %v397_v22 = vadd.f32 %v389_v0, %v383_v4  ;;  %v455_v23 = vmul.f32 %v447_v61, %v441_v11 }
  0x31   : > { %v463_v24 = vadd.f32 %v461_v16, %v449_v7  ;;  %v464_v25 = vadd.f32 %v461_v16, %v450_v8  ;;  %v465_v26 = vadd.f32 %v461_v16, %v451_v9  ;;  %v466_v27 = vadd.f32 %v461_v16, %v452_v17 }
  0x32   : > { %v467_v29 = vadd.f32 %v461_v16, %v453_v19  ;;  %v468_v30 = vadd.f32 %v461_v16, %v454_v21  ;;  %v469_v31 = vadd.f32 %v461_v16, %v455_v23  ;;  %v398_v32 = vadd.f32 %v389_v0, %v384_v5 }
  0x33   : > { %v471_v33 = vadd.f32 %v463_v24, %v391_v13  ;;  %v472_v34 = vadd.f32 %v464_v25, %v392_v12  ;;  %v473_v35 = vadd.f32 %v465_v26, %v393_v14  ;;  %v474_v36 = vadd.f32 %v466_v27, %v394_v15 }
  0x34   : > { %v475_v37 = vadd.f32 %v467_v29, %v395_v18  ;;  %v476_v38 = vadd.f32 %v468_v30, %v396_v20  ;;  %v477_v39 = vadd.f32 %v469_v31, %v397_v22  ;;  %v456_v40 = vmul.f32 %v447_v61, %v442_v28 }
  0x35   : > { %v479_v41 = vmul.f32 0.5, %v471_v33  ;;  %v480_v42 = vmul.f32 0.5, %v472_v34  ;;  %v481_v43 = vmul.f32 0.5, %v473_v35  ;;  %v482_v44 = vmul.f32 0.5, %v474_v36 }
  0x36   : > { %v483_v45 = vmul.f32 0.5, %v475_v37  ;;  %v484_v46 = vmul.f32 0.5, %v476_v38  ;;  %v485_v47 = vmul.f32 0.5, %v477_v39  ;;  %v470_v48 = vadd.f32 %v461_v16, %v456_v40 }
  0x37   : > { %488 = vst.msk [vmem:[%s325_s11] sm:$0xff] %vm487_vm1, %v479_v41  ;;  %489 = vst.msk [vmem:[%s325_s11 + $0x8] sm:$0xff] %vm487_vm1, %v480_v42 }
  0x38   : > { %490 = vst.msk [vmem:[%s325_s11 + $0x10] sm:$0xff] %vm487_vm1, %v481_v43  ;;  %491 = vst.msk [vmem:[%s325_s11 + $0x18] sm:$0xff] %vm487_vm1, %v482_v44  ;;  %v478_v49 = vadd.f32 %v470_v48, %v398_v32 }
  0x39   : > { %492 = vst.msk [vmem:[%s325_s11 + $0x20] sm:$0xff] %vm487_vm1, %v483_v45  ;;  %493 = vst.msk [vmem:[%s325_s11 + $0x28] sm:$0xff] %vm487_vm1, %v484_v46 }
  0x3a   : > { %494 = vst.msk [vmem:[%s325_s11 + $0x30] sm:$0xff] %vm487_vm1, %v485_v47  ;;  %v486_v50 = vmul.f32 0.5, %v478_v49 }
  0x3c   : > { %495 = vst.msk [vmem:[%s325_s11 + $0x38] sm:$0xff] %vm487_vm1, %v486_v50 }
  0x3d PF: > { %s18_s27 = sadd.s32 1, %s598_s27  }
  0x3e   : > { %p15_p4 = scmp.ge.s32.totalorder %s18_s27, 4  }
  0x40   :  { %17 = sbr.rel (!%p15_p4) target bundleno = 1 (0x1), region = 85 }

</bundles_post_ra>
